<compile_context>
chip_gen: v5e
topology: v5e:2x2
jax: 0.10.0
libtpu: 0.0.40
codegen_flags: <defaults>
</compile_context>

<pallas_src>
import functools
import math

import jax
import jax.numpy as jnp
from jax.experimental import pallas as pl
from jax.experimental.pallas import tpu as pltpu


def _highway_conv1d_kernel(x_ref, w_ref, b_ref, o_ref, xp_ref, *,
                           kernel_size, dilation, pad_left, pad_right):
    """Fused HighwayConv1d forward for one batch element (NCL layout).

    x_ref  : (1, C, L)        input block, native dtype
    w_ref  : (K, 2C, C)       per-tap conv weights (w_pt[:, :, k] == w_ref[k])
    b_ref  : (2C, 1)          conv bias (column so it broadcasts over L)
    o_ref  : (1, C, L)        highway output
    xp_ref : (C, L + pad)     VMEM halo scratch (zero-padded copy of x)
    """
    c = o_ref.shape[1]
    l = o_ref.shape[2]

    x = x_ref[0]                                   # (C, L), single contiguous load

    # Fused zero padding: zero the halo columns every step (the scratch
    # persists across grid steps and megacore shards, so never gate this on
    # program_id), then drop the block into the middle.
    if pad_left:
        xp_ref[:, pl.ds(0, pad_left)] = jnp.zeros((c, pad_left), x.dtype)
    if pad_right:
        xp_ref[:, pl.ds(pad_left + l, pad_right)] = jnp.zeros((c, pad_right), x.dtype)
    xp_ref[:, pl.ds(pad_left, l)] = x

    # Per-tap MXU accumulation: K matmuls of shape (2C, C) @ (C, L) with f32
    # accumulation (no im2col concatenate, no K*C-wide copy of the input).
    acc = jnp.dot(w_ref[0], xp_ref[:, pl.ds(0, l)],
                  preferred_element_type=jnp.float32)
    for k in range(1, kernel_size):
        acc = acc + jnp.dot(w_ref[k], xp_ref[:, pl.ds(k * dilation, l)],
                            preferred_element_type=jnp.float32)
    acc = acc + b_ref[...].astype(jnp.float32)     # (2C, L) + (2C, 1) broadcast

    h1 = jax.nn.sigmoid(acc[:c])                   # gate: first C output rows
    h2 = acc[c:]
    xf = x.astype(jnp.float32)
    out = xf + h1 * (h2 - xf)                      # == h1*h2 + (1-h1)*x

    o_ref[0] = out.astype(o_ref.dtype)             # one contiguous store


class HighwayConv1dPallas:
    """JAX/Pallas port of PyTorch HighwayConv1d (inference forward)."""

    def __init__(self, key, in_channels=128, kernel_size=3, stride=1,
                 dilation=1, dropout_rate=0.0, padding='same', groups=1,
                 bias=True, normalization=None, dtype=jnp.float32):
        if padding not in ('same', 'left', 'right'):
            raise ValueError("padding should be 'same', 'left' or 'right'")
        assert groups == 1, "only groups=1 implemented"
        assert stride == 1, "highway residual requires stride == 1"
        # TODO(synk): normalization ('batch'/'syncbatch'/'layer') not implemented;
        #             PyTorch default is normalization=None.
        assert normalization in (None, ''), "normalization not implemented"
        # TODO(synk): dropout is identity at inference (dropout_rate unused; no RNG path).
        # Note: PyTorch MaskedConv1d does not zero positions beyond x_len in its
        # forward either; x_len is only length bookkeeping, matching this port.

        self.in_channels = in_channels
        self.kernel_size = kernel_size
        self.stride = stride
        self.dilation = dilation
        self.padding = padding
        self.dtype = dtype

        _pad = (kernel_size - 1) * dilation
        if padding == 'left':
            self.pad_left, self.pad_right = _pad, 0
        elif padding == 'right':
            self.pad_left, self.pad_right = 0, _pad
        else:  # 'same'
            self.pad_left = _pad // 2
            self.pad_right = _pad - self.pad_left

        c, k = in_channels, kernel_size
        bound = 1.0 / math.sqrt(c * k)              # PyTorch Conv1d default init
        wkey, bkey = jax.random.split(key)
        # PyTorch Conv1d weight layout: (C_out=2C, C_in=C, K)
        self.w_pt = jax.random.uniform(wkey, (2 * c, c, k), dtype, -bound, bound)
        self.b = (jax.random.uniform(bkey, (2 * c,), dtype, -bound, bound)
                  if bias else jnp.zeros((2 * c,), dtype))
        # Pre-arranged once at init: per-tap weights (K, 2C, C) and bias column.
        self.w_taps = jnp.transpose(self.w_pt, (2, 0, 1))
        self.b_col = self.b.reshape(2 * c, 1)

    def _vmem_plan(self, c, l, l_out, pad_total, act_itemsize):
        """Rough but intermediate-aware VMEM accounting + generation-aware cap."""
        k = self.kernel_size
        w_item = jnp.dtype(self.w_taps.dtype).itemsize
        blk_in = c * l * act_itemsize
        blk_out = c * l_out * act_itemsize
        w_bytes = k * (2 * c) * c * w_item + (2 * c) * 128 * 4   # weights + lane-padded bias
        scratch = c * (l + pad_total) * act_itemsize
        # f32 temporaries in the body: acc (2C,L) + h1/h2/xf/out (~4x C*L)
        temps = 2 * c * l_out * 4 + 4 * c * l_out * 4
        need = 2 * (blk_in + blk_out) + 2 * w_bytes + scratch + temps + (2 << 20)

        phys = 64 << 20                              # conservative (v7x physical)
        try:
            phys = int(pltpu.get_tpu_info().vmem_capacity_bytes)
        except Exception:
            pass
        budget = int(phys * 0.45)                    # leave headroom for the compiler
        return need, budget

    def __call__(self, x_ncl, x_len=None):
        b_sz, c, l = x_ncl.shape
        assert c == self.in_channels
        k, d = self.kernel_size, self.dilation
        pad_total = self.pad_left + self.pad_right
        l_out = l + pad_total - d * (k - 1)          # == l for stride=1

        need, budget = self._vmem_plan(c, l, l_out, pad_total,
                                       x_ncl.dtype.itemsize)
        if need > budget:
            # TODO(synk): add an L-tile grid axis with a (K-1)*dilation halo for
            # very long sequences instead of failing here.
            raise NotImplementedError(
                f"sequence too long for single-block VMEM plan "
                f"(need ~{need >> 20} MiB, budget {budget >> 20} MiB)")

        kernel = functools.partial(_highway_conv1d_kernel,
                                   kernel_size=k, dilation=d,
                                   pad_left=self.pad_left,
                                   pad_right=self.pad_right)

        out = pl.pallas_call(
            kernel,
            out_shape=jax.ShapeDtypeStruct((b_sz, c, l_out), x_ncl.dtype),
            grid=(b_sz,),                            # >= 2 parallel steps when B >= 2 (v7x)
            in_specs=[
                pl.BlockSpec((1, c, l), lambda g: (g, 0, 0)),
                pl.BlockSpec((k, 2 * c, c), lambda g: (0, 0, 0)),   # resident weights
                pl.BlockSpec((2 * c, 1), lambda g: (0, 0)),
            ],
            out_specs=pl.BlockSpec((1, c, l_out), lambda g: (g, 0, 0)),
            scratch_shapes=[pltpu.VMEM((c, l + pad_total), x_ncl.dtype)],
            compiler_params=pltpu.CompilerParams(
                dimension_semantics=("parallel",),
                vmem_limit_bytes=int(budget)),
        )(x_ncl, self.w_taps, self.b_col)

        if x_len is not None:
            x_len = jnp.floor(
                (x_len.astype(jnp.float32) + self.pad_left + self.pad_right
                 - d * (k - 1) - 1) / float(self.stride) + 1).astype(jnp.int32)
        return out, x_len


# ---------------------------------------------------------------------------
# Pure-JAX reference (mirrors the PyTorch HighwayConv1d forward) for checking.
# ---------------------------------------------------------------------------
def _reference(mod, x_ncl):
    xp = jnp.pad(x_ncl, ((0, 0), (0, 0), (mod.pad_left, mod.pad_right)))
    conv = jax.lax.conv_general_dilated(
        xp, mod.w_pt, window_strides=(1,), padding='VALID',
        rhs_dilation=(mod.dilation,),
        dimension_numbers=('NCH', 'OIH', 'NCH'))
    conv = conv + mod.b[None, :, None]
    c = mod.in_channels
    h1 = jax.nn.sigmoid(conv[:, :c, :])
    h2 = conv[:, c:, :]
    return h1 * h2 + (1.0 - h1) * x_ncl


if __name__ == "__main__":
    key = jax.random.PRNGKey(0)
    pkey, xkey = jax.random.split(key)

    B, C, L = 2, 128, 16
    mod = HighwayConv1dPallas(pkey, in_channels=C, kernel_size=3, dilation=1,
                              padding='same')

    x = jax.random.normal(xkey, (B, C, L), jnp.float32)
    x_len = jnp.array([L, L - 4], jnp.int32)

    y, y_len = mod(x, x_len)
    y = jax.block_until_ready(y)
    y_len = jax.block_until_ready(y_len)

    y_ref = _reference(mod, x)
    assert y.shape == (B, C, L), y.shape
    assert jnp.allclose(y, y_ref, atol=1e-4, rtol=1e-4), "mismatch vs reference"
    assert jnp.array_equal(y_len, x_len), "x_len preserved for 'same', stride 1"

    print("KERNEL_OK")
</pallas_src>

<mosaic_0001>
module attributes {stable_mosaic.version = 11 : i64} {
  func.func @_highway_conv1d_kernel(%arg0: i32, %arg1: memref<1x128x16xf32, #tpu.memory_space<vmem>>, %arg2: memref<3x256x128xf32, #tpu.memory_space<vmem>>, %arg3: memref<256x1xf32, #tpu.memory_space<vmem>>, %arg4: memref<1x128x16xf32, #tpu.memory_space<vmem>>, %arg5: memref<128x18xf32, #tpu.memory_space<vmem>>) attributes {dimension_semantics = [#tpu.dimension_semantics<parallel>], iteration_bounds = array<i64: 2>, scalar_prefetch = 0 : i64, scratch_operands = 1 : i64, tpu.core_type = #tpu.core_type<tc>, window_params = [{transform_indices = @transform_0, window_bounds = array<i64: 1, 128, 16>}, {pipeline_mode = #tpu.pipeline_mode<synchronous>, transform_indices = @transform_1, window_bounds = array<i64: 3, 256, 128>}, {pipeline_mode = #tpu.pipeline_mode<synchronous>, transform_indices = @transform_2, window_bounds = array<i64: 256, 1>}, {transform_indices = @transform_3, window_bounds = array<i64: 1, 128, 16>}]} {
    %c0 = arith.constant 0 : index
    %c0_0 = arith.constant 0 : index
    %c0_1 = arith.constant 0 : index
    %0 = vector.load %arg1[%c0, %c0_0, %c0_1] : memref<1x128x16xf32, #tpu.memory_space<vmem>>, vector<1x128x16xf32>
    %1 = vector.shape_cast %0 : vector<1x128x16xf32> to vector<128x16xf32>
    %cst = arith.constant 0.000000e+00 : f32
    %2 = vector.broadcast %cst : f32 to vector<128x1xf32>
    %c0_2 = arith.constant 0 : index
    %c0_3 = arith.constant 0 : index
    %3 = vector.load %arg5[%c0_2, %c0_3] : memref<128x18xf32, #tpu.memory_space<vmem>>, vector<128x1xf32>
    tpu.vector_store %arg5[%c0_2, %c0_3], %2 {strides = array<i32>} : memref<128x18xf32, #tpu.memory_space<vmem>>, vector<128x1xf32>,
    %cst_4 = arith.constant 0.000000e+00 : f32
    %4 = vector.broadcast %cst_4 : f32 to vector<128x1xf32>
    %c0_5 = arith.constant 0 : index
    %c17 = arith.constant 17 : index
    %5 = vector.load %arg5[%c0_5, %c17] : memref<128x18xf32, #tpu.memory_space<vmem>>, vector<128x1xf32>
    tpu.vector_store %arg5[%c0_5, %c17], %4 {strides = array<i32>} : memref<128x18xf32, #tpu.memory_space<vmem>>, vector<128x1xf32>,
    %c0_6 = arith.constant 0 : index
    %c1 = arith.constant 1 : index
    %6 = vector.load %arg5[%c0_6, %c1] : memref<128x18xf32, #tpu.memory_space<vmem>>, vector<128x16xf32>
    tpu.vector_store %arg5[%c0_6, %c1], %1 {strides = array<i32>} : memref<128x18xf32, #tpu.memory_space<vmem>>, vector<128x16xf32>,
    %c0_7 = arith.constant 0 : index
    %c0_8 = arith.constant 0 : index
    %c0_9 = arith.constant 0 : index
    %7 = vector.load %arg2[%c0_7, %c0_8, %c0_9] : memref<3x256x128xf32, #tpu.memory_space<vmem>>, vector<1x256x128xf32>
    %8 = vector.shape_cast %7 : vector<1x256x128xf32> to vector<256x128xf32>
    %c0_10 = arith.constant 0 : index
    %c0_11 = arith.constant 0 : index
    %9 = vector.load %arg5[%c0_10, %c0_11] : memref<128x18xf32, #tpu.memory_space<vmem>>, vector<128x16xf32>
    %cst_12 = arith.constant dense<0.000000e+00> : vector<256x16xf32>
    %10 = tpu.matmul %8, %9, %cst_12 {dimension_numbers = #tpu.dot_dimension_numbers<[1], [0], [0], [1], [0, 0, 1, 1], [], []>} : vector<256x128xf32>, vector<128x16xf32>, vector<256x16xf32> -> vector<256x16xf32>
    %c1_13 = arith.constant 1 : index
    %c0_14 = arith.constant 0 : index
    %c0_15 = arith.constant 0 : index
    %11 = vector.load %arg2[%c1_13, %c0_14, %c0_15] : memref<3x256x128xf32, #tpu.memory_space<vmem>>, vector<1x256x128xf32>
    %12 = vector.shape_cast %11 : vector<1x256x128xf32> to vector<256x128xf32>
    %c0_16 = arith.constant 0 : index
    %c1_17 = arith.constant 1 : index
    %13 = vector.load %arg5[%c0_16, %c1_17] : memref<128x18xf32, #tpu.memory_space<vmem>>, vector<128x16xf32>
    %cst_18 = arith.constant dense<0.000000e+00> : vector<256x16xf32>
    %14 = tpu.matmul %12, %13, %cst_18 {dimension_numbers = #tpu.dot_dimension_numbers<[1], [0], [0], [1], [0, 0, 1, 1], [], []>} : vector<256x128xf32>, vector<128x16xf32>, vector<256x16xf32> -> vector<256x16xf32>
    %15 = arith.addf %10, %14 : vector<256x16xf32>
    %c2 = arith.constant 2 : index
    %c0_19 = arith.constant 0 : index
    %c0_20 = arith.constant 0 : index
    %16 = vector.load %arg2[%c2, %c0_19, %c0_20] : memref<3x256x128xf32, #tpu.memory_space<vmem>>, vector<1x256x128xf32>
    %17 = vector.shape_cast %16 : vector<1x256x128xf32> to vector<256x128xf32>
    %c0_21 = arith.constant 0 : index
    %c2_22 = arith.constant 2 : index
    %18 = vector.load %arg5[%c0_21, %c2_22] : memref<128x18xf32, #tpu.memory_space<vmem>>, vector<128x16xf32>
    %cst_23 = arith.constant dense<0.000000e+00> : vector<256x16xf32>
    %19 = tpu.matmul %17, %18, %cst_23 {dimension_numbers = #tpu.dot_dimension_numbers<[1], [0], [0], [1], [0, 0, 1, 1], [], []>} : vector<256x128xf32>, vector<128x16xf32>, vector<256x16xf32> -> vector<256x16xf32>
    %20 = arith.addf %15, %19 : vector<256x16xf32>
    %c0_24 = arith.constant 0 : index
    %c0_25 = arith.constant 0 : index
    %21 = vector.load %arg3[%c0_24, %c0_25] : memref<256x1xf32, #tpu.memory_space<vmem>>, vector<256x1xf32>
    %22 = vector.broadcast %21 : vector<256x1xf32> to vector<256x16xf32>
    %23 = arith.addf %20, %22 : vector<256x16xf32>
    %24 = vector.extract_strided_slice %23 {offsets = [0, 0], sizes = [128, 16], strides = [1, 1]} : vector<256x16xf32> to vector<128x16xf32>
    %25 = arith.negf %24 : vector<128x16xf32>
    %26 = math.exp %25 : vector<128x16xf32>
    %cst_26 = arith.constant 1.000000e+00 : f32
    %27 = vector.broadcast %cst_26 : f32 to vector<128x16xf32>
    %28 = arith.addf %27, %26 : vector<128x16xf32>
    %29 = arith.divf %27, %28 : vector<128x16xf32>
    %30 = vector.extract_strided_slice %23 {offsets = [128, 0], sizes = [128, 16], strides = [1, 1]} : vector<256x16xf32> to vector<128x16xf32>
    %31 = arith.subf %30, %1 : vector<128x16xf32>
    %32 = arith.mulf %29, %31 : vector<128x16xf32>
    %33 = arith.addf %1, %32 : vector<128x16xf32>
    %c0_27 = arith.constant 0 : index
    %c0_28 = arith.constant 0 : index
    %c0_29 = arith.constant 0 : index
    %34 = vector.load %arg4[%c0_27, %c0_28, %c0_29] : memref<1x128x16xf32, #tpu.memory_space<vmem>>, vector<1x128x16xf32>
    %35 = vector.shape_cast %34 : vector<1x128x16xf32> to vector<128x16xf32>
    %36 = vector.shape_cast %33 : vector<128x16xf32> to vector<1x128x16xf32>
    tpu.vector_store %arg4[%c0_27, %c0_28, %c0_29], %36 {strides = array<i32>} : memref<1x128x16xf32, #tpu.memory_space<vmem>>, vector<1x128x16xf32>,
    return
  }
  func.func @transform_0(%arg0: i32) -> (i32, i32, i32) {
    %c0_i32 = arith.constant 0 : i32
    %c0_i32_0 = arith.constant 0 : i32
    %c0_i32_1 = arith.constant 0 : i32
    return %arg0, %c0_i32, %c0_i32_0 : i32, i32, i32
  }
  func.func @transform_1(%arg0: i32) -> (i32, i32, i32) {
    %c0_i32 = arith.constant 0 : i32
    %c0_i32_0 = arith.constant 0 : i32
    %c0_i32_1 = arith.constant 0 : i32
    %c0_i32_2 = arith.constant 0 : i32
    return %c0_i32, %c0_i32_0, %c0_i32_1 : i32, i32, i32
  }
  func.func @transform_2(%arg0: i32) -> (i32, i32) {
    %c0_i32 = arith.constant 0 : i32
    %c0_i32_0 = arith.constant 0 : i32
    %c0_i32_1 = arith.constant 0 : i32
    return %c0_i32, %c0_i32_0 : i32, i32
  }
  func.func @transform_3(%arg0: i32) -> (i32, i32, i32) {
    %c0_i32 = arith.constant 0 : i32
    %c0_i32_0 = arith.constant 0 : i32
    %c0_i32_1 = arith.constant 0 : i32
    return %arg0, %c0_i32, %c0_i32_0 : i32, i32, i32
  }
}

</mosaic_0001>

<bundles_post_ra>
// kernel: tpu_custom_call.1
= control target key start
LH: loop header
LB: loop body
LE: loop exit
PB: predicated region body
PF: predicated region fallthrough
CT: control target
= control target key end

     0   :  { %8 = vsyncpa [#allocation4], 0  ;;  %s1914_s12 = smov 0   ;;  %s2946_s0 = inlined_call_operand.vmem [shape: f32[2,128,16], index: 0, kind: input, shape index: {}]   ;;  %s2947_s1 = inlined_call_operand.hbm [shape: f32[3,256,128], index: 1, kind: input, shape index: {}]   ;;  %s2948_s2 = inlined_call_operand.vmem [shape: f32[256,1], index: 2, kind: input, shape index: {}]   ;;  %s2949_s3 = inlined_call_operand.vmem [shape: f32[2,128,16], index: 3, kind: output, shape index: {}]  }
   0x1 LB: > { %s124_s15 = sshll.u32 %s2947_s1, 4  ;;  %s1576_s16 = sadd.s32 4294967295, %s1884_s12   ;;  %s1884_s12 = sphi %s1914_s12, %s14_s12   ;;  %s125_s15 = int_to_ptr.hbm [resolvable:$true] %s124_s15 }
   0x2   : > { %p1578_p0 = scmp.ge.s32.totalorder %s1884_s12, 1  ;;  %p113_p1 = scmp.lt.s32.totalorder %s1884_s12, 3 }
   0x3   : > { %p1663_p2 = scmp.eq.s32.totalorder %s1576_s16, 0  ;;  %s1886_s17 = smov [#allocation3]  }
   0x4   : > { %p114_p3 = pnand %p1578_p0, %p113_p1  ;;  %s126_s18 = sshll.u32 %s1886_s17, 4  ;;  %s127_s18 = int_to_ptr.vmem [resolvable:$true] %s126_s18 }
   0x5   : > { %s1887_s19 = smov 128   ;;  %s1888_s20 = smov 8  }
   0x6   : > { %p1659_p4 = pneg %p114_p3  ;;  %153 = sbr.rel (%p114_p3) target bundleno = 638 (0x27e), region = 32 }
   0x8   : > { %p1660_p5 = pnand %p1663_p2, %p1659_p4 }
   0xa   : > { %1662 = dma.hbm_to_vmem [thread:$0]  (!%p1660_p5), %s125_s15, 12288, %s127_s18, [#allocation4], %s1887_s19, %s1887_s19, %s1888_s20  }
   0xb   : > { %1879 = dma.done.wait (%p1663_p2), [#allocation4], 12288  }
   0xc   : > { %1881 = vsyncadd (%p1663_p2), [#allocation4], 4294955008  ;;  %p178_p6 = scmp.lt.s32.totalorder %s1576_s16, 1  ;;  %s1889_s25 = smov 1   ;;  %vm204_vm0 = vcmask 7168   ;;  %vm221_vm1 = vcmask 146568  }
   0xd   : > { %v1890_v6 = vmov 0.0   ;;  %vm302_vm2 = vcmask 138248   ;;  %s1891_s26 = smov 127   ;;  %s1892_s27 = smov 126  }
   0xe   : > { %s3003_s16 = smov (!%p178_p6, %s1576_s16), 1  ;;  %220 = vst.msk [vmem:[#allocation2 + $0x78] sm:$0xff] %vm204_vm0, %v1890_v6 }
   0xf   : > { %s1605_s21 = sshll.u32 %s3003_s16, 7  ;;  %237 = vst.msk [vmem:[#allocation2 + $0x78] sm:$0xff] %vm221_vm1, %v1890_v6 }
  0x10   : > { %s1933_s24 = scalar_lea.vmem %s2946_s0, %s1605_s21  ;;  %205 = vst.msk [vmem:[#allocation2] sm:$0xff] %vm204_vm0, %v1890_v6 }
  0x11   : > { %v203_v0 = vld [vmem:[%s1933_s24 + $0x78] sm:$0xff]  ;;  %v201_v1 = vld [vmem:[%s1933_s24 + $0x68] sm:$0xff]  ;;  %v202_v3 = vld [vmem:[%s1933_s24 + $0x70] sm:$0xff]  ;;  %206 = vst.msk [vmem:[#allocation2 + $0x8] sm:$0xff] %vm204_vm0, %v1890_v6 }
  0x12   : > { %284 = vrot.lane.b32.xlu0 %v203_v0, %s1889_s25  ;;  %280 = vrot.lane.b32.xlu1 %v201_v1, %s1889_s25  ;;  %v199_v2 = vld [vmem:[%s1933_s24 + $0x58] sm:$0xff]  ;;  %v200_v4 = vld [vmem:[%s1933_s24 + $0x60] sm:$0xff]  ;;  %207 = vst.msk [vmem:[#allocation2 + $0x10] sm:$0xff] %vm204_vm0, %v1890_v6 }
  0x13   : > { %276 = vrot.lane.b32.xlu2 %v199_v2, %s1889_s25  ;;  %v198_v5 = vld [vmem:[%s1933_s24 + $0x50] sm:$0xff]  ;;  %v197_v7 = vld [vmem:[%s1933_s24 + $0x48] sm:$0xff]  ;;  %v196_v8 = vld [vmem:[%s1933_s24 + $0x40] sm:$0xff]  ;;  %208 = vst.msk [vmem:[#allocation2 + $0x18] sm:$0xff] %vm204_vm0, %v1890_v6 }
  0x14   : > { %v195_v9 = vld [vmem:[%s1933_s24 + $0x38] sm:$0xff]  ;;  %209 = vst.msk [vmem:[#allocation2 + $0x20] sm:$0xff] %vm204_vm0, %v1890_v6  ;;  %v194_v10 = vld [vmem:[%s1933_s24 + $0x30] sm:$0xff]  ;;  %v193_v11 = vld [vmem:[%s1933_s24 + $0x28] sm:$0xff] }
  0x15   : > { %210 = vst.msk [vmem:[#allocation2 + $0x28] sm:$0xff] %vm204_vm0, %v1890_v6  ;;  %v192_v12 = vld [vmem:[%s1933_s24 + $0x20] sm:$0xff]  ;;  %v191_v13 = vld [vmem:[%s1933_s24 + $0x18] sm:$0xff]  ;;  %v190_v14 = vld [vmem:[%s1933_s24 + $0x10] sm:$0xff] }
  0x16   : > { %211 = vst.msk [vmem:[#allocation2 + $0x30] sm:$0xff] %vm204_vm0, %v1890_v6  ;;  %v189_v15 = vld [vmem:[%s1933_s24 + $0x8] sm:$0xff]  ;;  %v188_v16 = vld [vmem:[%s1933_s24] sm:$0xff] }
  0x17   : > { %212 = vst.msk [vmem:[#allocation2 + $0x38] sm:$0xff] %vm204_vm0, %v1890_v6 }
  0x18   : > { %213 = vst.msk [vmem:[#allocation2 + $0x40] sm:$0xff] %vm204_vm0, %v1890_v6 }
  0x19   : > { %214 = vst.msk [vmem:[#allocation2 + $0x48] sm:$0xff] %vm204_vm0, %v1890_v6 }
  0x1a   : > { %282 = vrot.lane.b32.xlu0 %v202_v3, %s1889_s25  ;;  %278 = vrot.lane.b32.xlu1 %v200_v4, %s1889_s25  ;;  %215 = vst.msk [vmem:[#allocation2 + $0x50] sm:$0xff] %vm204_vm0, %v1890_v6 }
  0x1b   : > { %274 = vrot.lane.b32.xlu2 %v198_v5, %s1889_s25  ;;  %216 = vst.msk [vmem:[#allocation2 + $0x58] sm:$0xff] %vm204_vm0, %v1890_v6 }
  0x1c   : > { %217 = vst.msk [vmem:[#allocation2 + $0x60] sm:$0xff] %vm204_vm0, %v1890_v6 }
  0x1d   : > { %218 = vst.msk [vmem:[#allocation2 + $0x68] sm:$0xff] %vm204_vm0, %v1890_v6 }
  0x1e   : > { %219 = vst.msk [vmem:[#allocation2 + $0x70] sm:$0xff] %vm204_vm0, %v1890_v6 }
  0x1f   : > { %235 = vst.msk [vmem:[#allocation2 + $0x68] sm:$0xff] %vm221_vm1, %v1890_v6 }
  0x20   : > { %222 = vst.msk [vmem:[#allocation2] sm:$0xff] %vm221_vm1, %v1890_v6 }
  0x21   : > { %223 = vst.msk [vmem:[#allocation2 + $0x8] sm:$0xff] %vm221_vm1, %v1890_v6 }
  0x22   : > { %272 = vrot.lane.b32.xlu0 %v197_v7, %s1889_s25  ;;  %270 = vrot.lane.b32.xlu1 %v196_v8, %s1889_s25  ;;  %224 = vst.msk [vmem:[#allocation2 + $0x10] sm:$0xff] %vm221_vm1, %v1890_v6 }
  0x23   : > { %268 = vrot.lane.b32.xlu2 %v195_v9, %s1889_s25  ;;  %225 = vst.msk [vmem:[#allocation2 + $0x18] sm:$0xff] %vm221_vm1, %v1890_v6 }
  0x24   : > { %226 = vst.msk [vmem:[#allocation2 + $0x20] sm:$0xff] %vm221_vm1, %v1890_v6 }
  0x25   : > { %227 = vst.msk [vmem:[#allocation2 + $0x28] sm:$0xff] %vm221_vm1, %v1890_v6 }
  0x26   : > { %228 = vst.msk [vmem:[#allocation2 + $0x30] sm:$0xff] %vm221_vm1, %v1890_v6 }
  0x27   : > { %229 = vst.msk [vmem:[#allocation2 + $0x38] sm:$0xff] %vm221_vm1, %v1890_v6 }
  0x28   : > { %230 = vst.msk [vmem:[#allocation2 + $0x40] sm:$0xff] %vm221_vm1, %v1890_v6 }
  0x29   : > { %231 = vst.msk [vmem:[#allocation2 + $0x48] sm:$0xff] %vm221_vm1, %v1890_v6 }
  0x2a   : > { %266 = vrot.lane.b32.xlu0 %v194_v10, %s1889_s25  ;;  %264 = vrot.lane.b32.xlu1 %v193_v11, %s1889_s25  ;;  %232 = vst.msk [vmem:[#allocation2 + $0x50] sm:$0xff] %vm221_vm1, %v1890_v6 }
  0x2b   : > { %262 = vrot.lane.b32.xlu2 %v192_v12, %s1889_s25  ;;  %233 = vst.msk [vmem:[#allocation2 + $0x58] sm:$0xff] %vm221_vm1, %v1890_v6 }
  0x2c   : > { %234 = vst.msk [vmem:[#allocation2 + $0x60] sm:$0xff] %vm221_vm1, %v1890_v6 }
  0x2d   : > { %236 = vst.msk [vmem:[#allocation2 + $0x70] sm:$0xff] %vm221_vm1, %v1890_v6 }
  0x32   : > { %260 = vrot.lane.b32.xlu0 %v191_v13, %s1889_s25  ;;  %258 = vrot.lane.b32.xlu1 %v190_v14, %s1889_s25 }
  0x33   : > { %256 = vrot.lane.b32.xlu2 %v189_v15, %s1889_s25 }
  0x3a   : > { %254 = vrot.lane.b32.xlu0 %v188_v16, %s1889_s25  ;;  %v319_v16 = vld [vmem:[#allocation3] sm:$0xff]  ;;  %s2616_s25 = scalar_lea.vmem %s2949_s3, %s1605_s21 }
  0x6d   : > { %v277_v17 = vpop.permute.xlu2 %276 }
  0x6e   : > { %314 = vst.msk [vmem:[#allocation2 + $0x58] sm:$0xff] %vm302_vm2, %v277_v17 }
  0x75   : > { %v275_v18 = vpop.permute.xlu2 %274  ;;  %v2028_v34 = vld [vmem:[#allocation2 + $0x58] sm:$0xff] }
  0x76   : > { %313 = vst.msk [vmem:[#allocation2 + $0x50] sm:$0xff] %vm302_vm2, %v275_v18 }
  0x7d   : > { %v269_v19 = vpop.permute.xlu2 %268  ;;  %v2031_v35 = vld [vmem:[#allocation2 + $0x50] sm:$0xff] }
  0x7e   : > { %310 = vst.msk [vmem:[#allocation2 + $0x38] sm:$0xff] %vm302_vm2, %v269_v19  ;;  %v1701_v37 = vpack.i.bf16 %v2031_v35, %v2028_v34 }
  0x84   : > { %v285_v20 = vpop.permute.xlu0 %284  ;;  %v281_v21 = vpop.permute.xlu1 %280 }
  0x85   : > { %318 = vst.msk [vmem:[#allocation2 + $0x78] sm:$0xff] %vm302_vm2, %v285_v20  ;;  %v263_v22 = vpop.permute.xlu2 %262  ;;  %v2048_v41 = vld [vmem:[#allocation2 + $0x38] sm:$0xff] }
  0x86   : > { %316 = vst.msk [vmem:[#allocation2 + $0x68] sm:$0xff] %vm302_vm2, %v281_v21 }
  0x87   : > { %307 = vst.msk [vmem:[#allocation2 + $0x20] sm:$0xff] %vm302_vm2, %v263_v22 }
  0x8c   : > { %v283_v23 = vpop.permute.xlu0 %282  ;;  %v279_v24 = vpop.permute.xlu1 %278  ;;  %v2005_v25 = vld [vmem:[#allocation2 + $0x78] sm:$0xff] }
  0x8d   : > { %317 = vst.msk [vmem:[#allocation2 + $0x70] sm:$0xff] %vm302_vm2, %v283_v23  ;;  %577 = vmatpush.msra.mxu1 %v2005_v25  ;;  %v257_v26 = vpop.permute.xlu2 %256  ;;  %v2011_v27 = vld [vmem:[#allocation2 + $0x68] sm:$0xff] }
  0x8e   : > { %315 = vst.msk [vmem:[#allocation2 + $0x60] sm:$0xff] %vm302_vm2, %v279_v24  ;;  %v2066_v48 = vld [vmem:[#allocation2 + $0x20] sm:$0xff] }
  0x8f   : > { %304 = vst.msk [vmem:[#allocation2 + $0x8] sm:$0xff] %vm302_vm2, %v257_v26 }
  0x94   : > { %v273_v28 = vpop.permute.xlu0 %272  ;;  %v2013_v29 = vld [vmem:[#allocation2 + $0x70] sm:$0xff]  ;;  %v271_v30 = vpop.permute.xlu1 %270 }
  0x95   : > { %312 = vst.msk [vmem:[#allocation2 + $0x48] sm:$0xff] %vm302_vm2, %v273_v28  ;;  %578 = vmatpush.msra.mxu1 %v2013_v29  ;;  %v1681_v31 = vpack.i.bf16 %v2013_v29, %v2005_v25  ;;  %v2019_v32 = vld [vmem:[#allocation2 + $0x60] sm:$0xff]  ;;  %v320_v28 = vld [vmem:[#allocation3 + $0x8] sm:$0xff] }
  0x96   : > { %v1691_v33 = vpack.i.bf16 %v2019_v32, %v2011_v27  ;;  %311 = vst.msk [vmem:[#allocation2 + $0x40] sm:$0xff] %vm302_vm2, %v271_v30  ;;  %v2081_v53 = vld [vmem:[#allocation2 + $0x8] sm:$0xff] }
  0x97   : > { %579 = vmatpush.msra.mxu1 %v2011_v27  ;;  %1682 = vrot.lane.b32.xlu1 %v1681_v31, %s1891_s26 }
  0x98   : > { %1687 = vrot.lane.b32.xlu2 %v1681_v31, %s1892_s27  ;;  %1692 = vrot.lane.b32.xlu0 %v1691_v33, %s1891_s26 }
  0x99   : > { %580 = vmatpush.msra.mxu1 %v2019_v32 }
  0x9b   : > { %581 = vmatpush.msra.mxu1 %v2028_v34 }
  0x9c   : > { %v267_v36 = vpop.permute.xlu0 %266  ;;  %v2036_v38 = vld [vmem:[#allocation2 + $0x48] sm:$0xff]  ;;  %v265_v39 = vpop.permute.xlu1 %264 }
  0x9d   : > { %309 = vst.msk [vmem:[#allocation2 + $0x30] sm:$0xff] %vm302_vm2, %v267_v36  ;;  %582 = vmatpush.msra.mxu1 %v2031_v35  ;;  %v2041_v40 = vld [vmem:[#allocation2 + $0x40] sm:$0xff] }
  0x9e   : > { %308 = vst.msk [vmem:[#allocation2 + $0x28] sm:$0xff] %vm302_vm2, %v265_v39  ;;  %v1711_v42 = vpack.i.bf16 %v2041_v40, %v2036_v38 }
  0x9f   : > { %1697 = vrot.lane.b32.xlu1 %v1691_v33, %s1892_s27  ;;  %583 = vmatpush.msra.mxu1 %v2036_v38 }
  0xa0   : > { %1702 = vrot.lane.b32.xlu2 %v1701_v37, %s1891_s26  ;;  %1707 = vrot.lane.b32.xlu0 %v1701_v37, %s1892_s27 }
  0xa1   : > { %584 = vmatpush.msra.mxu1 %v2041_v40 }
  0xa3   : > { %585 = vmatpush.msra.mxu1 %v2048_v41 }
  0xa4   : > { %v2053_v43 = vld [vmem:[#allocation2 + $0x30] sm:$0xff]  ;;  %v261_v44 = vpop.permute.xlu0 %260  ;;  %v259_v45 = vpop.permute.xlu1 %258 }
  0xa5   : > { %v1721_v46 = vpack.i.bf16 %v2053_v43, %v2048_v41  ;;  %306 = vst.msk [vmem:[#allocation2 + $0x18] sm:$0xff] %vm302_vm2, %v261_v44  ;;  %586 = vmatpush.msra.mxu1 %v2053_v43  ;;  %v2059_v47 = vld [vmem:[#allocation2 + $0x28] sm:$0xff] }
  0xa6   : > { %305 = vst.msk [vmem:[#allocation2 + $0x10] sm:$0xff] %vm302_vm2, %v259_v45  ;;  %v1731_v49 = vpack.i.bf16 %v2066_v48, %v2059_v47 }
  0xa7   : > { %1712 = vrot.lane.b32.xlu1 %v1711_v42, %s1891_s26  ;;  %587 = vmatpush.msra.mxu1 %v2059_v47 }
  0xa8   : > { %1717 = vrot.lane.b32.xlu2 %v1711_v42, %s1892_s27  ;;  %1722 = vrot.lane.b32.xlu0 %v1721_v46, %s1891_s26 }
  0xa9   : > { %588 = vmatpush.msra.mxu1 %v2066_v48 }
  0xac   : > { %v255_v50 = vpop.permute.xlu0 %254  ;;  %v2071_v51 = vld [vmem:[#allocation2 + $0x18] sm:$0xff] }
  0xad   : > { %303 = vst.msk [vmem:[#allocation2] sm:$0xff] %vm302_vm2, %v255_v50  ;;  %589 = vmatpush.msra.mxu1 %v2071_v51  ;;  %v2075_v52 = vld [vmem:[#allocation2 + $0x10] sm:$0xff] }
  0xae   : > { %v1741_v54 = vpack.i.bf16 %v2075_v52, %v2071_v51 }
  0xaf   : > { %1727 = vrot.lane.b32.xlu1 %v1721_v46, %s1892_s27  ;;  %590 = vmatpush.msra.mxu1 %v2075_v52  ;;  %v321_v46 = vld [vmem:[#allocation3 + $0x10] sm:$0xff] }
  0xb0   : > { %1732 = vrot.lane.b32.xlu2 %v1731_v49, %s1891_s26  ;;  %1737 = vrot.lane.b32.xlu0 %v1731_v49, %s1892_s27 }
  0xb1   : > { %591 = vmatpush.msra.mxu1 %v2081_v53 }
  0xb4   : > { %v2086_v55 = vld [vmem:[#allocation2] sm:$0xff] }
  0xb5   : > { %v1751_v56 = vpack.i.bf16 %v2086_v55, %v2081_v53  ;;  %592 = vmatpush.msra.mxu1 %v2086_v55 }
  0xb6   : > { %593 = vmatmul.f32.vlgmr.msra.gmra.mxu1 %v319_v16  ;;  %v370_v16 = vld [vmem:[#allocation3 + $0x110] sm:$0xff] }
  0xb7   : > { %1742 = vrot.lane.b32.xlu1 %v1741_v54, %s1891_s26 }
  0xb8   : > { %1747 = vrot.lane.b32.xlu2 %v1741_v54, %s1892_s27  ;;  %1752 = vrot.lane.b32.xlu0 %v1751_v56, %s1891_s26 }
  0xbe   : > { %596 = vmatmul.f32.gmra.mxu1 %v320_v28  ;;  %v698_v28 = vld [vmem:[#allocation3 + $0x238] sm:$0xff] }
  0xbf   : > { %1757 = vrot.lane.b32.xlu1 %v1751_v56, %s1892_s27 }
  0xc6   : > { %599 = vmatmul.f32.gmra.mxu1 %v321_v46  ;;  %v377_v46 = vld [vmem:[#allocation3 + $0x148] sm:$0xff] }
  0xf2   : > { %v2095_v57 = vpop.permute.xlu2 %1687 }
  0xf3   : > { %v1689_v58 = vunpack.i.l.bf16 %v2095_v57  ;;  %v1690_v59 = vunpack.i.h.bf16 %v2095_v57  ;;  %v397_v57 = vld [vmem:[#allocation3 + $0x1e8] sm:$0xff] }
  0xf5   : > { %771 = vmatpush.msra.mxu2 %v1689_v58 }
  0xf7   : > { %772 = vmatpush.msra.mxu2 %v1690_v59 }
  0xfa   : > { %v1703_v61 = vpop.permute.xlu2 %1702 }
  0xfb   : > { %v1704_v5 = vunpack.i.l.bf16 %v1703_v61  ;;  %v1705_v8 = vunpack.i.h.bf16 %v1703_v61  ;;  %v368_v61 = vld [vmem:[#allocation3 + $0x100] sm:$0xff] }
 0x102   : > { %v2108_v7 = vpop.permute.xlu2 %1717 }
 0x103   : > { %v1719_v15 = vunpack.i.l.bf16 %v2108_v7  ;;  %v1720_v19 = vunpack.i.h.bf16 %v2108_v7  ;;  %v921_v7 = vld [vmem:[%s2948_s2 + $0x28] sm:$0xff] }
 0x109   : > { %v1683_v60 = vpop.permute.xlu1 %1682 }
 0x10a   : > { %v1693_v62 = vpop.permute.xlu0 %1692  ;;  %v1684_v63 = vunpack.i.l.bf16 %v1683_v60  ;;  %v1685_v0 = vunpack.i.h.bf16 %v1683_v60  ;;  %v1733_v20 = vpop.permute.xlu2 %1732  ;;  %v392_v60 = vld [vmem:[#allocation3 + $0x1c0] sm:$0xff] }
 0x10b   : > { %v1694_v1 = vunpack.i.l.bf16 %v1693_v62  ;;  %v1695_v2 = vunpack.i.h.bf16 %v1693_v62  ;;  %v1734_v24 = vunpack.i.l.bf16 %v1733_v20  ;;  %v1735_v30 = vunpack.i.h.bf16 %v1733_v20  ;;  %v923_v20 = vld [vmem:[%s2948_s2 + $0x38] sm:$0xff] }
 0x10c   : > { %464 = vmatpush.msra.mxu0 %v1684_v63  ;;  %1607 = vmatpush.msra.mxu3 %v1684_v63  ;;  %v1893_v63 = vmov 0  }
 0x10d   : > { %1762 = vset.pattern.permute.xlu0 %v1893_v63  ;;  %1763 = vset.pattern.permute.xlu1 %v1893_v63 }
 0x10e   : > { %465 = vmatpush.msra.mxu0 %v1685_v0  ;;  %1608 = vmatpush.msra.mxu3 %v1685_v0 }
 0x10f   : > { %1761 = vset.pattern.permute.xlu2 %v1893_v63  ;;  %v345_v63 = vld [vmem:[#allocation3 + $0xd0] sm:$0xff] }
 0x110   : > { %466 = vmatpush.msra.mxu0 %v1694_v1  ;;  %1609 = vmatpush.msra.mxu3 %v1694_v1  ;;  %v917_v1 = vld [vmem:[%s2948_s2 + $0x8] sm:$0xff] }
 0x111   : > { %v2103_v3 = vpop.permute.xlu1 %1697  ;;  %955 = vperm.xlu0 %1762, %v917_v1   ;;  %v701_v1 = vld [vmem:[#allocation3 + $0x250] sm:$0xff] }
 0x112   : > { %v2105_v4 = vpop.permute.xlu0 %1707  ;;  %467 = vmatpush.msra.mxu0 %v1695_v2  ;;  %1610 = vmatpush.msra.mxu3 %v1695_v2  ;;  %v1699_v6 = vunpack.i.l.bf16 %v2103_v3  ;;  %v1700_v9 = vunpack.i.h.bf16 %v2103_v3  ;;  %v2138_v36 = vpop.permute.xlu2 %1747  ;;  %v322_v2 = vld [vmem:[#allocation3 + $0x18] sm:$0xff]  ;;  %v929_v3 = vld [vmem:[%s2948_s2 + $0x68] sm:$0xff] }
 0x113   : > { %v1709_v10 = vunpack.i.l.bf16 %v2105_v4  ;;  %v1710_v12 = vunpack.i.h.bf16 %v2105_v4  ;;  %v1749_v45 = vunpack.i.l.bf16 %v2138_v36  ;;  %v1750_v54 = vunpack.i.h.bf16 %v2138_v36  ;;  %602 = vmatmul.f32.gmra.mxu1 %v322_v2  ;;  %v398_v4 = vld [vmem:[#allocation3 + $0x1f0] sm:$0xff]  ;;  %v343_v36 = vld [vmem:[#allocation3 + $0xc0] sm:$0xff]  ;;  %v933_v2 = vld [vmem:[%s2948_s2 + $0x88] sm:$0xff] }
 0x114   : > { %468 = vmatpush.msra.mxu0 %v1704_v5  ;;  %1611 = vmatpush.msra.mxu3 %v1704_v5 }
 0x115   : > { %773 = vmatpush.msra.mxu2 %v1699_v6 }
 0x116   : > { %469 = vmatpush.msra.mxu0 %v1705_v8  ;;  %1612 = vmatpush.msra.mxu3 %v1705_v8  ;;  %v691_v8 = vld [vmem:[#allocation3 + $0x200] sm:$0xff] }
 0x117   : > { %774 = vmatpush.msra.mxu2 %v1700_v9 }
 0x119   : > { %775 = vmatpush.msra.mxu2 %v1709_v10  ;;  %v1713_v11 = vpop.permute.xlu1 %1712 }
 0x11a   : > { %v1723_v13 = vpop.permute.xlu0 %1722  ;;  %v1714_v14 = vunpack.i.l.bf16 %v1713_v11  ;;  %v1715_v17 = vunpack.i.h.bf16 %v1713_v11  ;;  %v393_v11 = vld [vmem:[#allocation3 + $0x1c8] sm:$0xff] }
 0x11b   : > { %776 = vmatpush.msra.mxu2 %v1710_v12  ;;  %v1724_v18 = vunpack.i.l.bf16 %v1723_v13  ;;  %v1725_v21 = vunpack.i.h.bf16 %v1723_v13  ;;  %v369_v13 = vld [vmem:[#allocation3 + $0x108] sm:$0xff] }
 0x11c   : > { %470 = vmatpush.msra.mxu0 %v1714_v14  ;;  %1613 = vmatpush.msra.mxu3 %v1714_v14  ;;  %v323_v14 = vld [vmem:[#allocation3 + $0x20] sm:$0xff] }
 0x11d   : > { %777 = vmatpush.msra.mxu2 %v1719_v15  ;;  %605 = vmatmul.f32.gmra.mxu1 %v323_v14  ;;  %v702_v14 = vld [vmem:[#allocation3 + $0x258] sm:$0xff] }
 0x11e   : > { %471 = vmatpush.msra.mxu0 %v1715_v17  ;;  %1614 = vmatpush.msra.mxu3 %v1715_v17  ;;  %v916_v17 = vld [vmem:[%s2948_s2] sm:$0xff] }
 0x11f   : > { %778 = vmatpush.msra.mxu2 %v1720_v19  ;;  %950 = vperm.xlu2 %1761, %v916_v17   ;;  %v380_v17 = vld [vmem:[#allocation3 + $0x160] sm:$0xff] }
 0x120   : > { %472 = vmatpush.msra.mxu0 %v1724_v18  ;;  %1615 = vmatpush.msra.mxu3 %v1724_v18  ;;  %v920_v18 = vld [vmem:[%s2948_s2 + $0x20] sm:$0xff] }
 0x121   : > { %v2127_v22 = vpop.permute.xlu1 %1727 }
 0x122   : > { %v2129_v23 = vpop.permute.xlu0 %1737  ;;  %473 = vmatpush.msra.mxu0 %v1725_v21  ;;  %1616 = vmatpush.msra.mxu3 %v1725_v21  ;;  %v1729_v26 = vunpack.i.l.bf16 %v2127_v22  ;;  %v1730_v31 = vunpack.i.h.bf16 %v2127_v22  ;;  %v928_v21 = vld [vmem:[%s2948_s2 + $0x60] sm:$0xff]  ;;  %v399_v22 = vld [vmem:[#allocation3 + $0x1f8] sm:$0xff] }
 0x123   : > { %v1739_v33 = vunpack.i.l.bf16 %v2129_v23  ;;  %v1740_v39 = vunpack.i.h.bf16 %v2129_v23  ;;  %v924_v23 = vld [vmem:[%s2948_s2 + $0x40] sm:$0xff] }
 0x124   : > { %474 = vmatpush.msra.mxu0 %v1734_v24  ;;  %1617 = vmatpush.msra.mxu3 %v1734_v24  ;;  %v375_v24 = vld [vmem:[#allocation3 + $0x138] sm:$0xff] }
 0x125   : > { %779 = vmatpush.msra.mxu2 %v1729_v26 }
 0x126   : > { %475 = vmatpush.msra.mxu0 %v1735_v30  ;;  %1618 = vmatpush.msra.mxu3 %v1735_v30  ;;  %v935_v30 = vld [vmem:[%s2948_s2 + $0x98] sm:$0xff] }
 0x127   : > { %780 = vmatpush.msra.mxu2 %v1730_v31 }
 0x129   : > { %781 = vmatpush.msra.mxu2 %v1739_v33  ;;  %v1743_v37 = vpop.permute.xlu1 %1742 }
 0x12a   : > { %v1744_v42 = vunpack.i.l.bf16 %v1743_v37  ;;  %v1753_v44 = vpop.permute.xlu0 %1752  ;;  %v1745_v49 = vunpack.i.h.bf16 %v1743_v37  ;;  %v330_v37 = vld [vmem:[#allocation3 + $0x58] sm:$0xff] }
 0x12b   : > { %782 = vmatpush.msra.mxu2 %v1740_v39  ;;  %v1754_v50 = vunpack.i.l.bf16 %v1753_v44  ;;  %v1755_v56 = vunpack.i.h.bf16 %v1753_v44  ;;  %v938_v44 = vld [vmem:[%s2948_s2 + $0xb0] sm:$0xff] }
 0x12c   : > { %476 = vmatpush.msra.mxu0 %v1744_v42  ;;  %1619 = vmatpush.msra.mxu3 %v1744_v42  ;;  %v927_v42 = vld [vmem:[%s2948_s2 + $0x58] sm:$0xff] }
 0x12d   : > { %783 = vmatpush.msra.mxu2 %v1749_v45 }
 0x12e   : > { %477 = vmatpush.msra.mxu0 %v1745_v49  ;;  %1620 = vmatpush.msra.mxu3 %v1745_v49  ;;  %v344_v49 = vld [vmem:[#allocation3 + $0xc8] sm:$0xff] }
 0x12f   : > { %784 = vmatpush.msra.mxu2 %v1750_v54 }
 0x130   : > { %1621 = vmatpush.msra.mxu3 %v1754_v50  ;;  %478 = vmatpush.msra.mxu0 %v1754_v50  ;;  %v331_v50 = vld [vmem:[#allocation3 + $0x60] sm:$0xff] }
 0x131   : > { %v2151_v62 = vpop.permute.xlu1 %1757 }
 0x132   : > { %1622 = vmatpush.msra.mxu3 %v1755_v56  ;;  %479 = vmatpush.msra.mxu0 %v1755_v56  ;;  %v1759_v0 = vunpack.i.l.bf16 %v2151_v62  ;;  %v1760_v5 = vunpack.i.h.bf16 %v2151_v62  ;;  %v930_v56 = vld [vmem:[%s2948_s2 + $0x70] sm:$0xff] }
 0x133   : > { %552 = vmatmul.f32.vlgmr.msra.gmra.mxu3 %v392_v60  ;;  %480 = vmatmul.f32.vlgmr.msra.gmra.mxu0 %v368_v61  ;;  %v941_v60 = vld [vmem:[%s2948_s2 + $0xc8] sm:$0xff]  ;;  %v378_v62 = vld [vmem:[#allocation3 + $0x150] sm:$0xff] }
 0x134   : > { %1623 = vmatpush.msrb.mxu3 %v2005_v25  ;;  %785 = vmatpush.msra.mxu2 %v1759_v0  ;;  %v918_v25 = vld [vmem:[%s2948_s2 + $0x10] sm:$0xff]  ;;  %v937_v61 = vld [vmem:[%s2948_s2 + $0xa8] sm:$0xff] }
 0x135   : > { %960 = vperm.xlu1 %1763, %v918_v25   ;;  %v333_v25 = vld [vmem:[#allocation3 + $0x70] sm:$0xff] }
 0x136   : > { %1624 = vmatpush.msrb.mxu3 %v2013_v29  ;;  %786 = vmatpush.msra.mxu2 %v1760_v5  ;;  %v692_v29 = vld [vmem:[#allocation3 + $0x208] sm:$0xff] }
 0x137   : > { %787 = vmatmul.f32.vlgmr.msra.gmra.mxu2 %v691_v8  ;;  %v940_v8 = vld [vmem:[%s2948_s2 + $0xc0] sm:$0xff] }
 0x138   : > { %1625 = vmatpush.msrb.mxu3 %v2011_v27  ;;  %v394_v27 = vld [vmem:[#allocation3 + $0x1d0] sm:$0xff] }
 0x13a   : > { %1626 = vmatpush.msrb.mxu3 %v2019_v32  ;;  %v324_v32 = vld [vmem:[#allocation3 + $0x28] sm:$0xff] }
 0x13b   : > { %555 = vmatmul.f32.gmra.mxu3 %v393_v11  ;;  %483 = vmatmul.f32.gmra.mxu0 %v369_v13  ;;  %v379_v11 = vld [vmem:[#allocation3 + $0x158] sm:$0xff] }
 0x13c   : > { %1627 = vmatpush.msrb.mxu3 %v2028_v34  ;;  %v693_v34 = vld [vmem:[#allocation3 + $0x210] sm:$0xff]  ;;  %608 = vmatmul.f32.gmra.mxu1 %v324_v32  ;;  %v346_v13 = vld [vmem:[#allocation3 + $0xd8] sm:$0xff]  ;;  %v347_v32 = vld [vmem:[#allocation3 + $0xe0] sm:$0xff] }
 0x13d   : > { %970 = vperm.xlu1 %1763, %v920_v18   ;;  %v946_v18 = vld [vmem:[%s2948_s2 + $0xf0] sm:$0xff] }
 0x13e   : > { %1628 = vmatpush.msrb.mxu3 %v2031_v35  ;;  %v395_v35 = vld [vmem:[#allocation3 + $0x1d8] sm:$0xff] }
 0x13f   : > { %790 = vmatmul.f32.gmra.mxu2 %v692_v29  ;;  %v936_v29 = vld [vmem:[%s2948_s2 + $0xa0] sm:$0xff] }
 0x140   : > { %1629 = vmatpush.msrb.mxu3 %v2036_v38  ;;  %v371_v38 = vld [vmem:[#allocation3 + $0x118] sm:$0xff] }
 0x142   : > { %1630 = vmatpush.msrb.mxu3 %v2041_v40  ;;  %v325_v40 = vld [vmem:[#allocation3 + $0x30] sm:$0xff] }
 0x143   : > { %558 = vmatmul.f32.gmra.mxu3 %v394_v27  ;;  %486 = vmatmul.f32.gmra.mxu0 %v370_v16  ;;  %v947_v27 = vld [vmem:[%s2948_s2 + $0xf8] sm:$0xff] }
 0x144   : > { %1631 = vmatpush.msrb.mxu3 %v2048_v41  ;;  %v694_v41 = vld [vmem:[#allocation3 + $0x218] sm:$0xff]  ;;  %611 = vmatmul.f32.gmra.mxu1 %v325_v40  ;;  %v381_v40 = vld [vmem:[#allocation3 + $0x168] sm:$0xff] }
 0x145   : > { %985 = vperm.xlu1 %1763, %v923_v20   ;;  %v943_v16 = vld [vmem:[%s2948_s2 + $0xd8] sm:$0xff]  ;;  %v704_v20 = vld [vmem:[#allocation3 + $0x268] sm:$0xff] }
 0x146   : > { %1632 = vmatpush.msrb.mxu3 %v2053_v43  ;;  %v372_v43 = vld [vmem:[#allocation3 + $0x120] sm:$0xff] }
 0x147   : > { %793 = vmatmul.f32.gmra.mxu2 %v693_v34  ;;  %v334_v34 = vld [vmem:[#allocation3 + $0x78] sm:$0xff] }
 0x148   : > { %1633 = vmatpush.msrb.mxu3 %v2059_v47  ;;  %v396_v47 = vld [vmem:[#allocation3 + $0x1e0] sm:$0xff] }
 0x14a   : > { %1634 = vmatpush.msrb.mxu3 %v2066_v48  ;;  %v326_v48 = vld [vmem:[#allocation3 + $0x38] sm:$0xff] }
 0x14b   : > { %561 = vmatmul.f32.gmra.mxu3 %v395_v35  ;;  %489 = vmatmul.f32.gmra.mxu0 %v371_v38  ;;  %v703_v35 = vld [vmem:[#allocation3 + $0x260] sm:$0xff]  ;;  %v939_v38 = vld [vmem:[%s2948_s2 + $0xb8] sm:$0xff] }
 0x14c   : > { %1635 = vmatpush.msrb.mxu3 %v2071_v51  ;;  %v695_v51 = vld [vmem:[#allocation3 + $0x220] sm:$0xff]  ;;  %614 = vmatmul.f32.gmra.mxu1 %v326_v48  ;;  %v382_v48 = vld [vmem:[#allocation3 + $0x170] sm:$0xff] }
 0x14e   : > { %1636 = vmatpush.msrb.mxu3 %v2075_v52  ;;  %v919_v52 = vld [vmem:[%s2948_s2 + $0x18] sm:$0xff] }
 0x14f   : > { %796 = vmatmul.f32.gmra.mxu2 %v694_v41  ;;  %965 = vperm.xlu2 %1761, %v919_v52   ;;  %v348_v41 = vld [vmem:[#allocation3 + $0xe8] sm:$0xff] }
 0x150   : > { %1637 = vmatpush.msrb.mxu3 %v2081_v53  ;;  %v926_v53 = vld [vmem:[%s2948_s2 + $0x50] sm:$0xff] }
 0x151   : > { %1000 = vperm.xlu1 %1763, %v926_v53   ;;  %v942_v53 = vld [vmem:[%s2948_s2 + $0xd0] sm:$0xff] }
 0x152   : > { %1638 = vmatpush.msrb.mxu3 %v2086_v55  ;;  %v922_v55 = vld [vmem:[%s2948_s2 + $0x30] sm:$0xff] }
 0x153   : > { %492 = vmatmul.f32.gmra.mxu0 %v372_v43  ;;  %564 = vmatmul.f32.gmra.mxu3 %v396_v47  ;;  %v594_v43 = vpop.f32.mrf.mxu1  ;;  %v335_v47 = vld [vmem:[#allocation3 + $0x80] sm:$0xff] }
 0x154   : > { %1639 = vmatpush.msra.mxu3 %v1689_v58  ;;  %v373_v58 = vld [vmem:[#allocation3 + $0x128] sm:$0xff]  ;;  %980 = vperm.xlu0 %1762, %v922_v55  }
 0x155   : > { %v336_v55 = vld [vmem:[#allocation3 + $0x88] sm:$0xff] }
 0x156   : > { %1640 = vmatpush.msra.mxu3 %v1690_v59  ;;  %v327_v59 = vld [vmem:[#allocation3 + $0x40] sm:$0xff] }
 0x157   : > { %799 = vmatmul.f32.gmra.mxu2 %v695_v51  ;;  %617 = vmatmul.f32.gmra.mxu1 %v327_v59  ;;  %v349_v51 = vld [vmem:[#allocation3 + $0xf0] sm:$0xff]  ;;  %v350_v59 = vld [vmem:[#allocation3 + $0xf8] sm:$0xff] }
 0x158   : > { %1641 = vmatpush.msra.mxu3 %v1699_v6  ;;  %v696_v6 = vld [vmem:[#allocation3 + $0x228] sm:$0xff]  ;;  %975 = vperm.xlu2 %1761, %v921_v7  }
 0x159   : > { %1015 = vperm.xlu1 %1763, %v929_v3   ;;  %v945_v3 = vld [vmem:[%s2948_s2 + $0xe8] sm:$0xff] }
 0x15a   : > { %1642 = vmatpush.msra.mxu3 %v1700_v9  ;;  %v925_v9 = vld [vmem:[%s2948_s2 + $0x48] sm:$0xff] }
 0x15b   : > { %495 = vmatmul.f32.gmra.mxu0 %v373_v58  ;;  %567 = vmatmul.f32.gmra.mxu3 %v397_v57  ;;  %v597_v52 = vpop.f32.mrf.mxu1  ;;  %v705_v58 = vld [vmem:[#allocation3 + $0x270] sm:$0xff]  ;;  %v383_v57 = vld [vmem:[#allocation3 + $0x178] sm:$0xff] }
 0x15c   : > { %1643 = vmatpush.msra.mxu3 %v1709_v10  ;;  %v374_v10 = vld [vmem:[#allocation3 + $0x130] sm:$0xff]  ;;  %995 = vperm.xlu0 %1762, %v925_v9  }
 0x15d   : > { %v337_v9 = vld [vmem:[#allocation3 + $0x90] sm:$0xff] }
 0x15e   : > { %1644 = vmatpush.msra.mxu3 %v1710_v12  ;;  %v328_v12 = vld [vmem:[#allocation3 + $0x48] sm:$0xff] }
 0x15f   : > { %802 = vmatmul.f32.gmra.mxu2 %v696_v6  ;;  %620 = vmatmul.f32.gmra.mxu1 %v328_v12  ;;  %v384_v12 = vld [vmem:[#allocation3 + $0x180] sm:$0xff] }
 0x160   : > { %1645 = vmatpush.msra.mxu3 %v1719_v15  ;;  %v697_v15 = vld [vmem:[#allocation3 + $0x230] sm:$0xff]  ;;  %990 = vperm.xlu2 %1761, %v924_v23   ;;  %v716_v23 = vld [vmem:[#allocation3 + $0x2c8] sm:$0xff] }
 0x162   : > { %1646 = vmatpush.msra.mxu3 %v1720_v19  ;;  %v932_v19 = vld [vmem:[%s2948_s2 + $0x80] sm:$0xff] }
 0x163   : > { %498 = vmatmul.f32.gmra.mxu0 %v374_v10  ;;  %570 = vmatmul.f32.gmra.mxu3 %v398_v4  ;;  %v600_v6 = vpop.f32.mrf.mxu1  ;;  %v706_v10 = vld [vmem:[#allocation3 + $0x278] sm:$0xff] }
 0x164   : > { %1647 = vmatpush.msra.mxu3 %v1729_v26  ;;  %1010 = vperm.xlu0 %1762, %v928_v21   ;;  %v329_v26 = vld [vmem:[#allocation3 + $0x50] sm:$0xff]  ;;  %v338_v21 = vld [vmem:[#allocation3 + $0x98] sm:$0xff] }
 0x165   : > { %1030 = vperm.xlu1 %1763, %v932_v19  }
 0x166   : > { %1648 = vmatpush.msra.mxu3 %v1730_v31  ;;  %v931_v31 = vld [vmem:[%s2948_s2 + $0x78] sm:$0xff] }
 0x167   : > { %805 = vmatmul.f32.gmra.mxu2 %v697_v15  ;;  %623 = vmatmul.f32.gmra.mxu1 %v329_v26  ;;  %v715_v15 = vld [vmem:[#allocation3 + $0x2c0] sm:$0xff] }
 0x168   : > { %1649 = vmatpush.msra.mxu3 %v1739_v33  ;;  %v376_v33 = vld [vmem:[#allocation3 + $0x140] sm:$0xff]  ;;  %1005 = vperm.xlu2 %1761, %v927_v42  }
 0x16a   : > { %1650 = vmatpush.msra.mxu3 %v1740_v39  ;;  %v699_v39 = vld [vmem:[#allocation3 + $0x240] sm:$0xff] }
 0x16b   : > { %501 = vmatmul.f32.gmra.mxu0 %v375_v24  ;;  %573 = vmatmul.f32.gmra.mxu3 %v399_v22  ;;  %v707_v24 = vld [vmem:[#allocation3 + $0x280] sm:$0xff] }
 0x16c   : > { %1651 = vmatpush.msra.mxu3 %v1749_v45  ;;  %1025 = vperm.xlu0 %1762, %v931_v31   ;;  %v934_v45 = vld [vmem:[%s2948_s2 + $0x90] sm:$0xff] }
 0x16d   : > { %1045 = vperm.xlu1 %1763, %v935_v30  }
 0x16e   : > { %1652 = vmatpush.msra.mxu3 %v1750_v54  ;;  %v700_v54 = vld [vmem:[#allocation3 + $0x248] sm:$0xff] }
 0x16f   : > { %808 = vmatmul.f32.gmra.mxu2 %v698_v28  ;;  %626 = vmatmul.f32.gmra.mxu1 %v330_v37  ;;  %v385_v28 = vld [vmem:[#allocation3 + $0x188] sm:$0xff]  ;;  %v339_v37 = vld [vmem:[#allocation3 + $0xa0] sm:$0xff] }
 0x170   : > { %1653 = vmatpush.msra.mxu3 %v1759_v0  ;;  %1020 = vperm.xlu2 %1761, %v930_v56   ;;  %v332_v0 = vld [vmem:[#allocation3 + $0x68] sm:$0xff] }
 0x172   : > { %1654 = vmatpush.msra.mxu3 %v1760_v5  ;;  %v944_v5 = vld [vmem:[%s2948_s2 + $0xe0] sm:$0xff] }
 0x173   : > { %504 = vmatmul.f32.gmra.mxu0 %v376_v33  ;;  %665 = vmatmul.f32.vlgmr.msrb.gmra.mxu3 %v343_v36 }
 0x174   : > { %1040 = vperm.xlu0 %1762, %v934_v45   ;;  %v386_v45 = vld [vmem:[#allocation3 + $0x190] sm:$0xff] }
 0x175   : > { %1060 = vperm.xlu1 %1763, %v938_v44  }
 0x177   : > { %811 = vmatmul.f32.gmra.mxu2 %v699_v39  ;;  %629 = vmatmul.f32.gmra.mxu1 %v331_v50  ;;  %v708_v39 = vld [vmem:[#allocation3 + $0x288] sm:$0xff] }
 0x178   : > { %1035 = vperm.xlu2 %1761, %v933_v2  }
 0x17b   : > { %507 = vmatmul.f32.gmra.mxu0 %v377_v46  ;;  %668 = vmatmul.f32.gmra.mxu3 %v344_v49  ;;  %v717_v46 = vld [vmem:[#allocation3 + $0x2d0] sm:$0xff] }
 0x17c   : > { %1055 = vperm.xlu0 %1762, %v937_v61   ;;  %v709_v61 = vld [vmem:[#allocation3 + $0x290] sm:$0xff] }
 0x17d   : > { %1075 = vperm.xlu1 %1763, %v941_v60   ;;  %v340_v60 = vld [vmem:[#allocation3 + $0xa8] sm:$0xff] }
 0x17f   : > { %814 = vmatmul.f32.gmra.mxu2 %v700_v54  ;;  %632 = vmatmul.f32.gmra.mxu1 %v332_v0  ;;  %v387_v0 = vld [vmem:[#allocation3 + $0x198] sm:$0xff] }
 0x180   : > { %1050 = vperm.xlu2 %1761, %v936_v29  }
 0x183   : > { %510 = vmatmul.f32.gmra.mxu0 %v378_v62  ;;  %671 = vmatmul.f32.gmra.mxu3 %v345_v63 }
 0x184   : > { %1070 = vperm.xlu0 %1762, %v940_v8  }
 0x185   : > { %1090 = vperm.xlu1 %1763, %v944_v5  }
 0x187   : > { %817 = vmatmul.f32.gmra.mxu2 %v701_v1  ;;  %635 = vmatmul.f32.gmra.mxu1 %v333_v25  ;;  %v718_v1 = vld [vmem:[#allocation3 + $0x2d8] sm:$0xff] }
 0x188   : > { %1065 = vperm.xlu2 %1761, %v939_v38   ;;  %v710_v25 = vld [vmem:[#allocation3 + $0x298] sm:$0xff] }
 0x189   : > { %v342_v38 = vld [vmem:[#allocation3 + $0xb8] sm:$0xff] }
 0x18b   : > { %513 = vmatmul.f32.gmra.mxu0 %v379_v11  ;;  %674 = vmatmul.f32.gmra.mxu3 %v346_v13  ;;  %v341_v13 = vld [vmem:[#allocation3 + $0xb0] sm:$0xff] }
 0x18c   : > { %1085 = vperm.xlu0 %1762, %v943_v16   ;;  %v719_v16 = vld [vmem:[#allocation3 + $0x2e0] sm:$0xff] }
 0x18d   : > { %1105 = vperm.xlu1 %1763, %v947_v27   ;;  %v388_v27 = vld [vmem:[#allocation3 + $0x1a0] sm:$0xff] }
 0x18f   : > { %820 = vmatmul.f32.gmra.mxu2 %v702_v14  ;;  %638 = vmatmul.f32.gmra.mxu1 %v334_v34 }
 0x190   : > { %1080 = vperm.xlu2 %1761, %v942_v53   ;;  %v603_v19 = vpop.f32.mrf.mxu1  ;;  %v712_v53 = vld [vmem:[#allocation3 + $0x2a8] sm:$0xff] }
 0x193   : > { %516 = vmatmul.f32.gmra.mxu0 %v380_v17  ;;  %677 = vmatmul.f32.gmra.mxu3 %v347_v32 }
 0x194   : > { %1100 = vperm.xlu0 %1762, %v946_v18   ;;  %v711_v18 = vld [vmem:[#allocation3 + $0x2a0] sm:$0xff] }
 0x197   : > { %823 = vmatmul.f32.gmra.mxu2 %v703_v35  ;;  %641 = vmatmul.f32.gmra.mxu1 %v335_v47  ;;  %v720_v47 = vld [vmem:[#allocation3 + $0x2e8] sm:$0xff] }
 0x198   : > { %1095 = vperm.xlu2 %1761, %v945_v3   ;;  %v721_v3 = vld [vmem:[#allocation3 + $0x2f0] sm:$0xff] }
 0x19a   : > { %v606_v33 = vpop.f32.mrf.mxu1 }
 0x19b   : > { %519 = vmatmul.f32.gmra.mxu0 %v381_v40  ;;  %680 = vmatmul.f32.gmra.mxu3 %v348_v41 }
 0x19f   : > { %826 = vmatmul.f32.gmra.mxu2 %v704_v20  ;;  %644 = vmatmul.f32.gmra.mxu1 %v336_v55 }
 0x1a3   : > { %522 = vmatmul.f32.gmra.mxu0 %v382_v48  ;;  %683 = vmatmul.f32.gmra.mxu3 %v349_v51 }
 0x1a7   : > { %829 = vmatmul.f32.gmra.mxu2 %v705_v58  ;;  %647 = vmatmul.f32.gmra.mxu1 %v337_v9 }
 0x1ab   : > { %525 = vmatmul.f32.gmra.mxu0 %v383_v57  ;;  %686 = vmatmul.f32.gmra.mxu3 %v350_v59  ;;  %v390_v57 = vld [vmem:[#allocation3 + $0x1b0] sm:$0xff]  ;;  %v956_v59 = vpop.permute.xlu0 %955 }
 0x1af   : > { %832 = vmatmul.f32.gmra.mxu2 %v706_v10  ;;  %650 = vmatmul.f32.gmra.mxu1 %v338_v21  ;;  %v391_v21 = vld [vmem:[#allocation3 + $0x1b8] sm:$0xff] }
 0x1b0   : > { %v481_v4 = vpop.f32.mrf.mxu0 }
 0x1b1   : > { %v595_v7 = vadd.f32 %v594_v43, %v481_v4  ;;  %v389_v43 = vld [vmem:[#allocation3 + $0x1a8] sm:$0xff] }
 0x1b3   : > { %528 = vmatmul.f32.gmra.mxu0 %v384_v12  ;;  %859 = vmatmul.f32.vlgmr.msra.gmra.mxu3 %v715_v15  ;;  %v713_v15 = vld [vmem:[#allocation3 + $0x2b0] sm:$0xff] }
 0x1b6   : > { %v2303_v22 = vpop.f32.mrf.mxu3 }
 0x1b7   : > { %835 = vmatmul.f32.gmra.mxu2 %v707_v24  ;;  %653 = vmatmul.f32.gmra.mxu1 %v339_v37  ;;  %v714_v37 = vld [vmem:[#allocation3 + $0x2b8] sm:$0xff] }
 0x1b8   : > { %v484_v26 = vpop.f32.mrf.mxu0 }
 0x1b9   : > { %v598_v30 = vadd.f32 %v597_v52, %v484_v26  ;;  %v609_v54 = vpop.f32.mrf.mxu1  ;;  %v722_v26 = vld [vmem:[#allocation3 + $0x2f8] sm:$0xff] }
 0x1ba   : > { %v788_v31 = vpop.f32.mrf.mxu2 }
 0x1bb   : > { %v2305_v36 = vadd.f32 %v788_v31, %v595_v7  ;;  %531 = vmatmul.f32.gmra.mxu0 %v385_v28  ;;  %862 = vmatmul.f32.gmra.mxu3 %v716_v23 }
 0x1be   : > { %v2307_v42 = vpop.f32.mrf.mxu3 }
 0x1bf   : > { %838 = vmatmul.f32.gmra.mxu2 %v708_v39  ;;  %656 = vmatmul.f32.gmra.mxu1 %v340_v60 }
 0x1c0   : > { %v487_v44 = vpop.f32.mrf.mxu0 }
 0x1c1   : > { %v601_v49 = vadd.f32 %v600_v6, %v487_v44  ;;  %v612_v8 = vpop.f32.mrf.mxu1  ;;  %v961_v6 = vpop.permute.xlu1 %960 }
 0x1c2   : > { %v791_v50 = vpop.f32.mrf.mxu2 }
 0x1c3   : > { %v2309_v56 = vadd.f32 %v791_v50, %v598_v30  ;;  %534 = vmatmul.f32.gmra.mxu0 %v386_v45  ;;  %865 = vmatmul.f32.gmra.mxu3 %v717_v46  ;;  %v951_v46 = vpop.permute.xlu2 %950 }
 0x1c6   : > { %v2311_v62 = vpop.f32.mrf.mxu3  ;;  %v981_v28 = vpop.permute.xlu0 %980 }
 0x1c7   : > { %841 = vmatmul.f32.gmra.mxu2 %v709_v61  ;;  %659 = vmatmul.f32.gmra.mxu1 %v341_v13  ;;  %v1109_v13 = vadd.f32 %v956_v59, %v2309_v56 }
 0x1c8   : > { %v490_v63 = vpop.f32.mrf.mxu0 }
 0x1c9   : > { %v604_v2 = vadd.f32 %v603_v19, %v490_v63  ;;  %v615_v34 = vpop.f32.mrf.mxu1  ;;  %v2329_v24 = vpop.permute.xlu1 %970 }
 0x1ca   : > { %v794_v5 = vpop.f32.mrf.mxu2 }
 0x1cb   : > { %v2313_v11 = vadd.f32 %v794_v5, %v601_v49  ;;  %537 = vmatmul.f32.gmra.mxu0 %v387_v0  ;;  %868 = vmatmul.f32.gmra.mxu3 %v718_v1  ;;  %v966_v1 = vpop.permute.xlu2 %965  ;;  %v1108_v5 = vadd.f32 %v951_v46, %v2305_v36 }
 0x1ce   : > { %v2315_v14 = vpop.f32.mrf.mxu3 }
 0x1cf   : > { %844 = vmatmul.f32.gmra.mxu2 %v710_v25  ;;  %662 = vmatmul.f32.gmra.mxu1 %v342_v38  ;;  %v1587_v25 = vmul.f32 -1.442695, %v1108_v5 }
 0x1d0   : > { %v493_v29 = vpop.f32.mrf.mxu0 }
 0x1d1   : > { %v607_v17 = vadd.f32 %v606_v33, %v493_v29  ;;  %v986_v60 = vpop.permute.xlu1 %985  ;;  %1764 = vpow2.f32 %v1587_v25 }
 0x1d2   : > { %v797_v32 = vpop.f32.mrf.mxu2 }
 0x1d3   : > { %v2317_v35 = vadd.f32 %v797_v32, %v604_v2  ;;  %540 = vmatmul.f32.gmra.mxu0 %v388_v27  ;;  %871 = vmatmul.f32.gmra.mxu3 %v719_v16  ;;  %v1110_v16 = vadd.f32 %v961_v6, %v2313_v11  ;;  %v1588_v32 = vmul.f32 -1.442695, %v1109_v13 }
 0x1d4   : > { %v618_v51 = vpop.f32.mrf.mxu1 }
 0x1d5   : > { %1766 = vpow2.f32 %v1588_v32 }
 0x1d6   : > { %v2319_v40 = vpop.f32.mrf.mxu3 }
 0x1d7   : > { %847 = vmatmul.f32.gmra.mxu2 %v711_v18  ;;  %v1589_v18 = vmul.f32 -1.442695, %v1110_v16 }
 0x1d8   : > { %v496_v41 = vpop.f32.mrf.mxu0 }
 0x1d9   : > { %v610_v20 = vadd.f32 %v609_v54, %v496_v41  ;;  %v996_v41 = vpop.permute.xlu0 %995  ;;  %1768 = vpow2.f32 %v1589_v18 }
 0x1da   : > { %v800_v48 = vpop.f32.mrf.mxu2 }
 0x1db   : > { %v2321_v52 = vadd.f32 %v800_v48, %v607_v17  ;;  %543 = vmatmul.f32.gmra.mxu0 %v389_v43  ;;  %874 = vmatmul.f32.gmra.mxu3 %v720_v47  ;;  %v2350_v17 = vpop.permute.xlu2 %975 }
 0x1dc   : > { %v621_v4 = vpop.f32.mrf.mxu1 }
 0x1de   : > { %v2323_v55 = vpop.f32.mrf.mxu3 }
 0x1df   : > { %850 = vmatmul.f32.gmra.mxu2 %v712_v53 }
 0x1e0   : > { %v499_v58 = vpop.f32.mrf.mxu0 }
 0x1e1   : > { %v613_v9 = vadd.f32 %v612_v8, %v499_v58 }
 0x1e2   : > { %v803_v10 = vpop.f32.mrf.mxu2 }
 0x1e3   : > { %v2325_v12 = vadd.f32 %v803_v10, %v610_v20  ;;  %546 = vmatmul.f32.gmra.mxu0 %v390_v57  ;;  %877 = vmatmul.f32.gmra.mxu3 %v721_v3  ;;  %v1765_v20 = vpop.eup %1764  ;;  %v991_v53 = vpop.permute.xlu2 %990 }
 0x1e4   : > { %v2331_v31 = vpop.f32.mrf.mxu1  ;;  %v1767_v11 = vpop.eup %1766  ;;  %v2356_v58 = vadd.f32 1.0, %v1765_v20 }
 0x1e5   : > { %v1769_v6 = vpop.eup %1768  ;;  %v2359_v3 = vadd.f32 1.0, %v1767_v11 }
 0x1e6   : > { %v2327_v7 = vpop.f32.mrf.mxu3  ;;  %1770 = vrcp.f32 %v2356_v58  ;;  %vm1209_vm4 = vweird.f32 %v2356_v58 }
 0x1e7   : > { %853 = vmatmul.f32.gmra.mxu2 %v713_v15  ;;  %1772 = vrcp.f32 %v2359_v3  ;;  %vm1224_vm9 = vweird.f32 %v2359_v3 }
 0x1e8   : > { %v502_v19 = vpop.f32.mrf.mxu0 }
 0x1e9   : > { %v616_v23 = vadd.f32 %v615_v34, %v502_v19  ;;  %v2364_v19 = vpop.permute.xlu0 %1010 }
 0x1ea   : > { %v806_v30 = vpop.f32.mrf.mxu2 }
 0x1eb   : > { %v890_v33 = vadd.f32 %v806_v30, %v613_v9  ;;  %549 = vmatmul.f32.gmra.mxu0 %v391_v21  ;;  %880 = vmatmul.f32.gmra.mxu3 %v722_v26  ;;  %v1001_v9 = vpop.permute.xlu1 %1000  ;;  %v2368_v30 = vadd.f32 1.0, %v1769_v6  ;;  %v1006_v46 = vpop.permute.xlu2 %1005 }
 0x1ec   : > { %v2337_v54 = vpop.f32.mrf.mxu1 }
 0x1ed   : > { %v2333_v39 = vadd.f32 %v981_v28, %v890_v33  ;;  %vm1239_vm12 = vweird.f32 %v2368_v30 }
 0x1ee   : > { %v2335_v44 = vpop.f32.mrf.mxu3 }
 0x1ef   : > { %2950 = vst [vmem:[#allocation6_spill] sm:$0xff] %v2335_v44  ;;  %856 = vmatmul.f32.gmra.mxu2 %v714_v37  ;;  %v2372_v37 = vpop.eup %1770 }
 0x1f0   : > { %v505_v45 = vpop.f32.mrf.mxu0  ;;  %vm1210_vm3 = vweird.f32 %v2372_v37 }
 0x1f1   : > { %v619_v38 = vadd.f32 %v618_v51, %v505_v45  ;;  %v1111_v51 = vadd.f32 %v966_v1, %v2317_v35  ;;  %v1112_v45 = vadd.f32 %v2329_v24, %v2321_v52  ;;  %v2381_v1 = vpop.eup %1772  ;;  %v2387_v25 = vpop.permute.xlu0 %1025  ;;  %vm2438_vm5 = vmor %vm1209_vm4, %vm1210_vm3 }
 0x1f2   : > { %v809_v49 = vpop.f32.mrf.mxu2  ;;  %vm1225_vm7 = vweird.f32 %v2381_v1 }
 0x1f3   : > { %v891_v50 = vadd.f32 %v809_v49, %v616_v23  ;;  %v1590_v28 = vmul.f32 -1.442695, %v1111_v51  ;;  %v1591_v13 = vmul.f32 -1.442695, %v1112_v45  ;;  %v1113_v51 = vadd.f32 %v2350_v17, %v2325_v12  ;;  %vm2482_vm10 = vmor %vm1224_vm9, %vm1225_vm7 }
 0x1f4   : > { %v2344_v8 = vpop.f32.mrf.mxu1  ;;  %v1213_v45 = vand.u32 2147483647, %v2356_v58  ;;  %vm1492_vm7 = vcmask 130048  }
 0x1f5   : > { %v2339_v61 = vadd.f32 %v986_v60, %v891_v50 }
 0x1f6   : > { %v2341_v63 = vpop.f32.mrf.mxu3  ;;  %vm2442_vm6 = vcmp.eq.f32.partialorder %v1213_v45, 8.507059e+37 }
 0x1f8   : > { %v508_v0 = vpop.f32.mrf.mxu0 }
 0x1f9   : > { %v622_v59 = vadd.f32 %v621_v4, %v508_v0 }
 0x1fa   : > { %v812_v2 = vpop.f32.mrf.mxu2 }
 0x1fb   : > { %v892_v56 = vadd.f32 %v812_v2, %v619_v38  ;;  %v2385_v2 = vpop.permute.xlu1 %1015 }
 0x1fc   : > { %v2354_v43 = vpop.f32.mrf.mxu1 }
 0x1fd   : > { %v1116_v57 = vadd.f32 %v991_v53, %v892_v56 }
 0x1fe   : > { %v2347_v29 = vpop.f32.mrf.mxu3 }
 0x1ff   : > { %v1595_v15 = vmul.f32 -1.442695, %v1116_v57 }
 0x200   : > { %v511_v27 = vpop.f32.mrf.mxu0 }
 0x201   : > { %1774 = vpow2.f32 %v1595_v15  ;;  %v625_v33 = vadd.f32 %v2331_v31, %v511_v27  ;;  %v1205_v31 = vmul.f32 %v2372_v37, %v2356_v58 }
 0x202   : > { %v815_v34 = vpop.f32.mrf.mxu2  ;;  %1776 = vpow2.f32 %v1590_v28 }
 0x203   : > { %v893_v21 = vadd.f32 %v815_v34, %v622_v59  ;;  %1778 = vrcp.f32 %v2368_v30  ;;  %v1206_v38 = vsub.f32 1.0, %v1205_v31 }
 0x204   : > { %v2366_v23 = vpop.f32.mrf.mxu1 }
 0x205   : > { %v1117_v35 = vadd.f32 %v996_v41, %v893_v21  ;;  %v1220_v41 = vmul.f32 %v2381_v1, %v2359_v3  ;;  %v2415_v21 = vpop.permute.xlu1 %1030 }
 0x206   : > { %v2352_v36 = vpop.f32.mrf.mxu3 }
 0x207   : > { %v1596_v50 = vmul.f32 -1.442695, %v1117_v35  ;;  %v1775_v5 = vpop.eup %1774 }
 0x208   : > { %v514_v47 = vpop.f32.mrf.mxu0  ;;  %v1777_v52 = vpop.eup %1776  ;;  %v2394_v18 = vadd.f32 1.0, %v1775_v5 }
 0x209   : > { %v2391_v16 = vpop.eup %1778  ;;  %1780 = vpow2.f32 %v1596_v50  ;;  %v628_v34 = vadd.f32 %v2337_v54, %v514_v47  ;;  %v2400_v20 = vadd.f32 1.0, %v1777_v52  ;;  %v2407_v54 = vpop.permute.xlu2 %1020  ;;  %v1207_v47 = vmul.f32 %v2372_v37, %v1206_v38 }
 0x20a   : > { %v818_v48 = vpop.f32.mrf.mxu2  ;;  %1782 = vpow2.f32 %v1591_v13  ;;  %v1235_v56 = vmul.f32 %v2391_v16, %v2368_v30  ;;  %vm1240_vm8 = vweird.f32 %v2391_v16  ;;  %vm1329_vm2 = vweird.f32 %v2394_v18 }
 0x20b   : > { %v894_v60 = vadd.f32 %v818_v48, %v625_v33  ;;  %1784 = vrcp.f32 %v2394_v18  ;;  %v1208_v17 = vadd.f32 %v2372_v37, %v1207_v47  ;;  %vm2506_vm13 = vmor %vm1239_vm12, %vm1240_vm8  ;;  %v1260_v38 = vand.u32 2147483648, %v2400_v20 }
 0x20c   : > { %v2389_v24 = vpop.f32.mrf.mxu1  ;;  %v1236_v15 = vsub.f32 1.0, %v1235_v56  ;;  %1786 = vrcp.f32 %v2400_v20  ;;  %vm1254_vm1 = vweird.f32 %v2400_v20 }
 0x20d   : > { %v1118_v32 = vadd.f32 %v1001_v9, %v894_v60  ;;  %v1221_v9 = vsub.f32 1.0, %v1220_v41  ;;  %v1592_v60 = vmul.f32 -1.442695, %v1113_v51  ;;  %v1215_v41 = vand.u32 2147483648, %v2356_v58  ;;  %v2472_v45 = vpop.permute.xlu1 %1045 }
 0x20e   : > { %v2361_v10 = vpop.f32.mrf.mxu3  ;;  %v1243_v58 = vand.u32 2147483647, %v2368_v30 }
 0x20f   : > { %v1597_v53 = vmul.f32 -1.442695, %v1118_v32  ;;  %v1781_v59 = vpop.eup %1780 }
 0x210   : > { %v517_v26 = vpop.f32.mrf.mxu0  ;;  %v1783_v28 = vpop.eup %1782  ;;  %v2421_v50 = vadd.f32 1.0, %v1781_v59  ;;  %vm2510_vm14 = vcmp.eq.f32.partialorder %v1243_v58, 8.507059e+37 }
 0x211   : > { %1788 = vpow2.f32 %v1597_v53  ;;  %v631_v33 = vadd.f32 %v2344_v8, %v517_v26  ;;  %v2427_v31 = vpop.eup %1784  ;;  %v2429_v5 = vadd.f32 1.0, %v1783_v28  ;;  %v1222_v8 = vmul.f32 %v2381_v1, %v1221_v9  ;;  %v2462_v9 = vpop.permute.xlu2 %1035 }
 0x212   : > { %v821_v4 = vpop.f32.mrf.mxu2  ;;  %v1237_v26 = vmul.f32 %v2391_v16, %v1236_v15  ;;  %v2447_v56 = vpop.eup %1786  ;;  %1790 = vrcp.f32 %v2421_v50  ;;  %v1228_v53 = vand.u32 2147483647, %v2359_v3  ;;  %v1325_v59 = vmul.f32 %v2427_v31, %v2394_v18 }
 0x213   : > { %v895_v11 = vadd.f32 %v821_v4, %v628_v34  ;;  %v2417_v4 = vpop.permute.xlu0 %1040  ;;  %1792 = vpow2.f32 %v1592_v60  ;;  %v1250_v28 = vmul.f32 %v2447_v56, %v2400_v20  ;;  %v1216_v60 = vor.u32 1.1754944e-38, %v1215_v41 }
 0x214   : > { %v2423_v12 = vpop.f32.mrf.mxu1  ;;  %1794 = vrcp.f32 %v2429_v5  ;;  %v1238_v15 = vadd.f32 %v2391_v16, %v1237_v26  ;;  %v1326_v34 = vsub.f32 1.0, %v1325_v59  ;;  %vm2486_vm11 = vcmp.eq.f32.partialorder %v1228_v53, 8.507059e+37 }
 0x215   : > { %v1119_v35 = vadd.f32 %v1006_v46, %v895_v11  ;;  %v1230_v11 = vand.u32 2147483648, %v2359_v3  ;;  %v1275_v44 = vand.u32 2147483648, %v2429_v5  ;;  %vm1255_vm15 = vweird.f32 %v2447_v56 }
 0x216   : > { %v2377_v49 = vpop.f32.mrf.mxu3  ;;  %vm1330_vm0 = vweird.f32 %v2427_v31  ;;  %vm2628_vm8 = vmor %vm1254_vm1, %vm1255_vm15 }
 0x217   : > { %v1598_v46 = vmul.f32 -1.442695, %v1119_v35  ;;  %v1789_v47 = vpop.eup %1788  ;;  %vm2579_vm3 = vmor %vm1329_vm2, %vm1330_vm0  ;;  %vm1269_vm0 = vweird.f32 %v2429_v5 }
 0x218   : > { %v2379_v0 = vpop.f32.mrf.mxu0 }
 0x219   : > { %1796 = vpow2.f32 %v1598_v46  ;;  %v1593_v46 = vmul.f32 -1.442695, %v2333_v39 }
 0x21a   : > { %v824_v27 = vpop.f32.mrf.mxu2 }
 0x21b   : > { %v896_v52 = vadd.f32 %v824_v27, %v631_v33  ;;  %v1212_v27 = vsel %vm2438_vm5, %v2372_v37, %v1208_v17  ;;  %v1223_v37 = vadd.f32 %v2381_v1, %v1222_v8  ;;  %v634_v33 = vadd.f32 %v2354_v43, %v2379_v0  ;;  %v2478_v26 = vpop.permute.xlu0 %1055  ;;  %v2491_v0 = vpop.eup %1790 }
 0x21c   : > { %v2474_v17 = vadd.f32 1.0, %v1789_v47  ;;  %v1245_v8 = vand.u32 2147483648, %v2368_v30  ;;  %2956 = vst [vmem:[#allocation8_spill] sm:$0xff] %v2478_v26  ;;  %v2499_v41 = vpop.f32.mrf.mxu1  ;;  %v1251_v47 = vsub.f32 1.0, %v1250_v28  ;;  %v1340_v28 = vmul.f32 %v2491_v0, %v2421_v50 }
 0x21d   : > { %v1120_v35 = vadd.f32 %v2364_v19, %v896_v52  ;;  %v1231_v19 = vor.u32 1.1754944e-38, %v1230_v11  ;;  %v2497_v52 = vsel %vm2442_vm6, %v1216_v60, %v1212_v27  ;;  %v1227_v53 = vsel %vm2482_vm10, %v2381_v1, %v1223_v37  ;;  %v1793_v27 = vpop.eup %1792 }
 0x21e   : > { %v2402_v48 = vpop.f32.mrf.mxu3  ;;  %v1242_v1 = vsel %vm2506_vm13, %v2391_v16, %v1238_v15  ;;  %v2519_v37 = vpop.eup %1794  ;;  %1798 = vrcp.f32 %v2474_v17  ;;  %v1246_v58 = vor.u32 1.1754944e-38, %v1245_v8  ;;  %v1258_v15 = vand.u32 2147483647, %v2400_v20 }
 0x21f   : > { %v1599_v59 = vmul.f32 -1.442695, %v1120_v35  ;;  %v1797_v26 = vpop.eup %1796  ;;  %v2531_v16 = vsel %vm2486_vm11, %v1231_v19, %v1227_v53  ;;  %v2534_v39 = vadd.f32 1.0, %v1793_v27  ;;  %v2540_v8 = vor.u32 1.1754944e-38, %v1260_v38  ;;  %v2551_v53 = vpop.permute.xlu2 %1050 }
 0x220   : > { %v2404_v57 = vpop.f32.mrf.mxu0  ;;  %v1252_v43 = vmul.f32 %v2447_v56, %v1251_v47  ;;  %v2549_v19 = vmul.f32 %v2519_v37, %v2429_v5  ;;  %v2553_v30 = vadd.f32 1.0, %v1797_v26  ;;  %v2556_v38 = vor.u32 1.1754944e-38, %v1275_v44  ;;  %v2565_v47 = vpop.permute.xlu1 %1060 }
 0x221   : > { %1800 = vpow2.f32 %v1599_v59  ;;  %v1333_v59 = vand.u32 2147483647, %v2394_v18  ;;  %v1335_v44 = vand.u32 2147483648, %v2394_v18  ;;  %vm1344_vm5 = vweird.f32 %v2421_v50 }
 0x222   : > { %v2412_v6 = vpop.f32.mrf.mxu2  ;;  %1802 = vpow2.f32 %v1593_v46  ;;  %v2586_v18 = vadd.f32 %v2447_v56, %v1252_v43  ;;  %vm1345_vm6 = vweird.f32 %v2491_v0  ;;  %vm1359_vm12 = vweird.f32 %v2474_v17 }
 0x223   : > { %v897_v60 = vadd.f32 %v2412_v6, %v634_v33  ;;  %v1327_v6 = vmul.f32 %v2427_v31, %v1326_v34  ;;  %v2538_v33 = vsel %vm2510_vm14, %v1246_v58, %v1242_v1  ;;  %v637_v34 = vadd.f32 %v2366_v23, %v2404_v57  ;;  %vm2638_vm9 = vmor %vm1344_vm5, %vm1345_vm6 }
 0x224   : > { %v1341_v57 = vsub.f32 1.0, %v1340_v28  ;;  %v2562_v27 = vpop.eup %1798  ;;  %1804 = vrcp.f32 %v2534_v39  ;;  %v1266_v58 = vsub.f32 1.0, %v2549_v19  ;;  %v670_v28 = vadd.f32 %v2347_v29, %v2307_v42 }
 0x225   : > { %v1328_v23 = vadd.f32 %v2427_v31, %v1327_v6  ;;  %1806 = vrcp.f32 %v2553_v30  ;;  %v1071_v6 = vpop.permute.xlu0 %1070  ;;  %vm1334_vm4 = vcmp.eq.f32.partialorder %v1333_v59, 8.507059e+37  ;;  %vm1360_vm11 = vweird.f32 %v2562_v27 }
 0x226   : > { %v2431_v13 = vpop.f32.mrf.mxu3  ;;  %v1342_v19 = vmul.f32 %v2491_v0, %v1341_v57  ;;  %vm2678_vm13 = vcmp.eq.f32.partialorder %v1258_v15, 8.507059e+37  ;;  %vm1270_vm14 = vweird.f32 %v2519_v37  ;;  %vm2690_vm15 = vmor %vm1359_vm12, %vm1360_vm11 }
 0x227   : > { %2951 = vst [vmem:[#allocation7_spill] sm:$0xff] %v2431_v13  ;;  %v1121_v13 = vadd.f32 %v2385_v2, %v897_v60  ;;  %v667_v2 = vadd.f32 %v2341_v63, %v2303_v22  ;;  %v1332_v29 = vsel %vm2579_vm3, %v2427_v31, %v1328_v23  ;;  %vm1374_vm3 = vweird.f32 %v2553_v30  ;;  %vm2763_vm6 = vmor %vm1269_vm0, %vm1270_vm14 }
 0x228   : > { %v2436_v32 = vpop.f32.mrf.mxu0 }
 0x229   : > { %v1600_v22 = vmul.f32 -1.442695, %v1121_v13  ;;  %v2583_v13 = vpop.f32.mrf.mxu1 }
 0x22a   : > { %v2457_v51 = vpop.f32.mrf.mxu2 }
 0x22b   : > { %v898_v63 = vadd.f32 %v2457_v51, %v637_v34  ;;  %v1801_v51 = vpop.eup %1800  ;;  %1808 = vpow2.f32 %v1600_v22  ;;  %v1343_v22 = vadd.f32 %v2491_v0, %v1342_v19 }
 0x22c   : > { %v2603_v57 = vadd.f32 1.0, %v1801_v51  ;;  %v1350_v51 = vand.u32 2147483648, %v2421_v50 }
 0x22d   : > { %v1122_v43 = vadd.f32 %v2407_v54, %v898_v63 }
 0x22e   : > { %v2493_v3 = vpop.f32.mrf.mxu3  ;;  %1810 = vrcp.f32 %v2603_v57  ;;  %vm1389_vm11 = vweird.f32 %v2603_v57 }
 0x22f   : > { %2961 = vst [vmem:[#allocation9_spill] sm:$0xff] %v2493_v3 }
 0x230   : > { %v529_v3 = vpop.f32.mrf.mxu0 }
 0x231   : > { %v643_v60 = vadd.f32 %v2423_v12, %v529_v3  ;;  %v1355_v3 = vmul.f32 %v2562_v27, %v2474_v17 }
 0x232   : > { %v2526_v35 = vpop.f32.mrf.mxu2 }
 0x233   : > { %v1356_v54 = vsub.f32 1.0, %v1355_v3  ;;  %v1601_v3 = vmul.f32 -1.442695, %v1122_v43 }
 0x235   : > { %1812 = vpow2.f32 %v1601_v3 }
 0x236   : > { %v860_v26 = vpop.f32.mrf.mxu3 }
 0x237   : > { %v908_v1 = vadd.f32 %v860_v26, %v667_v2  ;;  %v2594_v2 = vpop.eup %1802  ;;  %v1336_v26 = vor.u32 1.1754944e-38, %v1335_v44  ;;  %v1348_v44 = vand.u32 2147483647, %v2421_v50  ;;  %v1347_v50 = vsel %vm2638_vm9, %v2491_v0, %v1343_v22 }
 0x238   : > { %v532_v46 = vpop.f32.mrf.mxu0  ;;  %v2601_v23 = vpop.eup %1804  ;;  %v673_v0 = vadd.f32 %v2352_v36, %v2311_v62  ;;  %v1365_v62 = vand.u32 2147483648, %v2474_v17 }
 0x239   : > { %v1132_v42 = vadd.f32 %v1071_v6, %v908_v1  ;;  %v640_v1 = vadd.f32 %v2389_v24, %v2436_v32  ;;  %v1828_v6 = vld [vmem:[%s1933_s24 + $0x40] sm:$0xff]  ;;  %v1337_v12 = vsel %vm1334_vm4, %v1336_v26, %v1332_v29  ;;  %v2609_v63 = vpop.eup %1806  ;;  %v2618_v24 = vpop.permute.xlu2 %1065  ;;  %vm1349_vm10 = vcmp.eq.f32.partialorder %v1348_v44, 8.507059e+37  ;;  %v1831_v44 = vld [vmem:[%s1933_s24 + $0x8] sm:$0xff] }
 0x23a   : > { %v836_v34 = vpop.f32.mrf.mxu2  ;;  %vm1375_vm2 = vweird.f32 %v2609_v63 }
 0x23b   : > { %v900_v11 = vadd.f32 %v836_v34, %v643_v60  ;;  %v1452_v31 = vsub.f32 %v1132_v42, %v1828_v6  ;;  %v646_v42 = vadd.f32 %v2499_v41, %v532_v46  ;;  %v899_v29 = vadd.f32 %v2526_v35, %v640_v1  ;;  %v2656_v35 = vpop.f32.mrf.mxu1  ;;  %vm2738_vm5 = vmor %vm1374_vm3, %vm1375_vm2 }
 0x23c   : > { %v1267_v46 = vmul.f32 %v2519_v37, %v1266_v58  ;;  %v1351_v58 = vor.u32 1.1754944e-38, %v1350_v51 }
 0x23d   : > { %v1124_v59 = vadd.f32 %v2415_v21, %v900_v11  ;;  %v1468_v60 = vmul.f32 %v1452_v31, %v1337_v12  ;;  %v1829_v21 = vld [vmem:[%s1933_s24] sm:$0xff]  ;;  %v1076_v12 = vpop.permute.xlu1 %1075 }
 0x23e   : > { %v863_v11 = vpop.f32.mrf.mxu3  ;;  %v2695_v20 = vadd.f32 %v2519_v37, %v1267_v46 }
 0x23f   : > { %v1444_v32 = vsub.f32 %v1124_v59, %v1829_v21  ;;  %v1484_v34 = vadd.f32 %v1828_v6, %v1468_v60  ;;  %v909_v19 = vadd.f32 %v863_v11, %v670_v28  ;;  %v1809_v28 = vpop.eup %1808  ;;  %v1357_v6 = vmul.f32 %v2562_v27, %v1356_v54 }
 0x240   : > { %v535_v26 = vpop.f32.mrf.mxu0  ;;  %v1594_v60 = vmul.f32 -1.442695, %v2339_v61  ;;  %v2662_v22 = vadd.f32 1.0, %v1809_v28  ;;  %v1352_v61 = vsel %vm1349_vm10, %v1351_v58, %v1347_v50  ;;  %v1363_v28 = vand.u32 2147483647, %v2474_v17 }
 0x241   : > { %v1460_v59 = vmul.f32 %v1444_v32, %v2497_v52  ;;  %v1370_v52 = vmul.f32 %v2609_v63, %v2553_v30  ;;  %1501 = vst.msk [vmem:[%s2616_s25 + $0x40] sm:$0xff] %vm1492_vm7, %v1484_v34  ;;  %v1133_v43 = vadd.f32 %v1076_v12, %v909_v19  ;;  %v1123_v34 = vadd.f32 %v2387_v25, %v899_v29  ;;  %v1830_v19 = vld [vmem:[%s1933_s24 + $0x48] sm:$0xff]  ;;  %v2669_v25 = vpop.eup %1810 }
 0x242   : > { %v839_v1 = vpop.f32.mrf.mxu2  ;;  %v1358_v51 = vadd.f32 %v2562_v27, %v1357_v6  ;;  %v649_v36 = vadd.f32 %v2583_v13, %v535_v26  ;;  %v2684_v50 = vadd.f32 1.0, %v2594_v2  ;;  %1814 = vrcp.f32 %v2662_v22  ;;  %v1813_v15 = vpop.eup %1812 }
 0x243   : > { %v1476_v32 = vadd.f32 %v1829_v21, %v1460_v59  ;;  %v901_v11 = vadd.f32 %v839_v1, %v646_v42  ;;  %v1453_v12 = vsub.f32 %v1133_v43, %v1830_v19  ;;  %v1371_v42 = vsub.f32 1.0, %v1370_v52  ;;  %v1081_v1 = vpop.permute.xlu2 %1080 }
 0x244   : > { %v1602_v59 = vmul.f32 -1.442695, %v1123_v34  ;;  %v1385_v2 = vmul.f32 %v2669_v25, %v2603_v57  ;;  %1816 = vpow2.f32 %v1594_v60  ;;  %v1366_v58 = vor.u32 1.1754944e-38, %v1365_v62 }
 0x245   : > { %1493 = vst.msk [vmem:[%s2616_s25] sm:$0xff] %vm1492_vm7, %v1476_v32  ;;  %v1125_v54 = vadd.f32 %v2462_v9, %v901_v11  ;;  %v1469_v21 = vmul.f32 %v1453_v12, %v1352_v61  ;;  %v1372_v32 = vmul.f32 %v2609_v63, %v1371_v42  ;;  %v2708_v34 = vmul.f32 %v2601_v23, %v2534_v39 }
 0x246   : > { %v866_v29 = vpop.f32.mrf.mxu3  ;;  %1818 = vpow2.f32 %v1602_v59  ;;  %vm1364_vm1 = vcmp.eq.f32.partialorder %v1363_v28, 8.507059e+37  ;;  %v1386_v42 = vsub.f32 1.0, %v1385_v2  ;;  %v1378_v59 = vand.u32 2147483647, %v2553_v30 }
 0x247   : > { %v1445_v3 = vsub.f32 %v1125_v54, %v1831_v44  ;;  %v1485_v9 = vadd.f32 %v1830_v19, %v1469_v21  ;;  %v910_v41 = vadd.f32 %v866_v29, %v673_v0  ;;  %v1832_v19 = vld [vmem:[%s1933_s24 + $0x50] sm:$0xff]  ;;  %v2713_v0 = vadd.f32 1.0, %v1813_v15  ;;  %v654_v54 = vpop.f32.mrf.mxu1 }
 0x248   : > { %v538_v43 = vpop.f32.mrf.mxu0  ;;  %1820 = vrcp.f32 %v2684_v50  ;;  %v1380_v29 = vand.u32 2147483648, %v2553_v30  ;;  %v2981_v30 = vsel %vm2628_vm8, %v2447_v56, %v2586_v18  ;;  %v1288_v15 = vand.u32 2147483647, %v2534_v39 }
 0x249   : > { %v1461_v13 = vmul.f32 %v1445_v3, %v2531_v16  ;;  %1502 = vst.msk [vmem:[%s2616_s25 + $0x48] sm:$0xff] %vm1492_vm7, %v1485_v9  ;;  %v1134_v26 = vadd.f32 %v1081_v1, %v910_v41  ;;  %v1362_v16 = vsel %vm2690_vm15, %v2562_v27, %v1358_v51  ;;  %v676_v27 = vadd.f32 %v2361_v10, %v2315_v14  ;;  %v1833_v3 = vld [vmem:[%s1933_s24 + $0x10] sm:$0xff] }
 0x24a   : > { %v842_v6 = vpop.f32.mrf.mxu2  ;;  %v1367_v60 = vsel %vm1364_vm1, %v1366_v58, %v1362_v16  ;;  %v1373_v51 = vadd.f32 %v2609_v63, %v1372_v32  ;;  %v652_v62 = vadd.f32 %v2656_v35, %v538_v43  ;;  %v2976_v41 = vand.u32 2147483647, %v2429_v5 }
 0x24b   : > { %v1477_v46 = vadd.f32 %v1831_v44, %v1461_v13  ;;  %v902_v11 = vadd.f32 %v842_v6, %v649_v36  ;;  %v1454_v12 = vsub.f32 %v1134_v26, %v1832_v19  ;;  %v2720_v44 = vpop.eup %1814  ;;  %v1086_v13 = vpop.permute.xlu0 %1085  ;;  %1822 = vrcp.f32 %v2713_v0  ;;  %v1837_v6 = vld [vmem:[%s1933_s24 + $0x20] sm:$0xff] }
 0x24c   : > { %vm2730_vm4 = vcmp.eq.f32.partialorder %v2976_v41, 8.507059e+37  ;;  %v1817_v1 = vpop.eup %1816  ;;  %v1262_v17 = vsel %vm2678_vm13, %v2540_v8, %v2981_v30  ;;  %v1377_v31 = vsel %vm2738_vm5, %v2609_v63, %v1373_v51  ;;  %v1387_v18 = vmul.f32 %v2669_v25, %v1386_v42  ;;  %v1834_v63 = vld [vmem:[%s1933_s24 + $0x58] sm:$0xff] }
 0x24d   : > { %1494 = vst.msk [vmem:[%s2616_s25 + $0x8] sm:$0xff] %vm1492_vm7, %v1477_v46  ;;  %v1126_v61 = vadd.f32 %v2417_v4, %v902_v11  ;;  %v1470_v21 = vmul.f32 %v1454_v12, %v1367_v60  ;;  %v1819_v2 = vpop.eup %1818  ;;  %v1381_v8 = vor.u32 1.1754944e-38, %v1380_v29  ;;  %v1290_v32 = vand.u32 2147483648, %v2534_v39 }
 0x24e   : > { %v869_v10 = vpop.f32.mrf.mxu3  ;;  %v1281_v46 = vsub.f32 1.0, %v2708_v34  ;;  %vm1379_vm8 = vcmp.eq.f32.partialorder %v1378_v59, 8.507059e+37  ;;  %v1272_v11 = vsel %vm2763_vm6, %v2519_v37, %v2695_v20  ;;  %v679_v5 = vadd.f32 %v2377_v49, %v2319_v40  ;;  %v1835_v20 = vld [vmem:[%s1933_s24 + $0x18] sm:$0xff]  ;;  %v2992_v59 = vld [vmem:[#allocation7_spill] sm:$0xff] }
 0x24f   : > { %v1446_v14 = vsub.f32 %v1126_v61, %v1833_v3  ;;  %v1486_v4 = vadd.f32 %v1832_v19, %v1470_v21  ;;  %v911_v36 = vadd.f32 %v869_v10, %v676_v27  ;;  %v2774_v19 = vpop.eup %1820  ;;  %v2778_v12 = vadd.f32 1.0, %v1819_v2  ;;  %v1836_v2 = vld [vmem:[%s1933_s24 + $0x60] sm:$0xff] }
 0x250   : > { %v541_v9 = vpop.f32.mrf.mxu0  ;;  %v1382_v27 = vsel %vm1379_vm8, %v1381_v8, %v1377_v31  ;;  %v1388_v61 = vadd.f32 %v2669_v25, %v1387_v18  ;;  %vm1390_vm9 = vweird.f32 %v2669_v25  ;;  %v2787_v37 = vadd.f32 1.0, %v1817_v1 }
 0x251   : > { %v1462_v35 = vmul.f32 %v1446_v14, %v2538_v33  ;;  %v1400_v33 = vmul.f32 %v2720_v44, %v2662_v22  ;;  %1503 = vst.msk [vmem:[%s2616_s25 + $0x50] sm:$0xff] %vm1492_vm7, %v1486_v4  ;;  %v1135_v26 = vadd.f32 %v1086_v13, %v911_v36  ;;  %v2785_v51 = vpop.eup %1822  ;;  %v1395_v49 = vand.u32 2147483648, %v2603_v57  ;;  %v657_v14 = vpop.f32.mrf.mxu1  ;;  %vm2797_vm12 = vmor %vm1389_vm11, %vm1390_vm9 }
 0x252   : > { %v845_v56 = vpop.f32.mrf.mxu2  ;;  %vm1284_vm10 = vweird.f32 %v2534_v39  ;;  %v1393_v29 = vand.u32 2147483647, %v2603_v57  ;;  %v1091_v4 = vpop.permute.xlu1 %1090  ;;  %1824 = vrcp.f32 %v2778_v12  ;;  %v1415_v57 = vmul.f32 %v2785_v51, %v2713_v0 }
 0x253   : > { %v1478_v52 = vadd.f32 %v1833_v3, %v1462_v35  ;;  %v903_v16 = vadd.f32 %v845_v56, %v652_v62  ;;  %v1455_v58 = vsub.f32 %v1135_v26, %v1834_v63  ;;  %v1401_v21 = vsub.f32 1.0, %v1400_v33 }
 0x254   : > { %v655_v3 = vadd.f32 %v654_v54, %v541_v9  ;;  %v1277_v54 = vsel %vm2730_vm4, %v2556_v38, %v1272_v11  ;;  %v1282_v9 = vmul.f32 %v2601_v23, %v1281_v46  ;;  %v1392_v1 = vsel %vm2797_vm12, %v2669_v25, %v1388_v61 }
 0x255   : > { %1495 = vst.msk [vmem:[%s2616_s25 + $0x10] sm:$0xff] %vm1492_vm7, %v1478_v52  ;;  %v1127_v34 = vadd.f32 %v2472_v45, %v903_v16  ;;  %v1471_v60 = vmul.f32 %v1455_v58, %v1382_v27  ;;  %v1402_v35 = vmul.f32 %v2720_v44, %v1401_v21  ;;  %v1295_v28 = vmul.f32 %v2774_v19, %v2684_v50  ;;  %v1096_v27 = vpop.permute.xlu2 %1095 }
 0x256   : > { %v872_v40 = vpop.f32.mrf.mxu3  ;;  %v1396_v43 = vor.u32 1.1754944e-38, %v1395_v49  ;;  %vm2815_vm13 = vcmp.eq.f32.partialorder %v1288_v15, 8.507059e+37  ;;  %1826 = vrcp.f32 %v2787_v37  ;;  %vm1394_vm14 = vcmp.eq.f32.partialorder %v1393_v29, 8.507059e+37 }
 0x257   : > { %v1447_v42 = vsub.f32 %v1127_v34, %v1835_v20  ;;  %v1487_v45 = vadd.f32 %v1834_v63, %v1471_v60  ;;  %v912_v10 = vadd.f32 %v872_v40, %v679_v5  ;;  %vm1285_vm15 = vweird.f32 %v2601_v23 }
 0x258   : > { %v544_v62 = vpop.f32.mrf.mxu0  ;;  %v682_v25 = vadd.f32 %v2402_v48, %v2323_v55  ;;  %v1397_v26 = vsel %vm1394_vm14, %v1396_v43, %v1392_v1  ;;  %v1283_v15 = vadd.f32 %v2601_v23, %v1282_v9  ;;  %v1403_v18 = vadd.f32 %v2720_v44, %v1402_v35  ;;  %v2830_v8 = vpop.eup %1824  ;;  %vm2840_vm2 = vmor %vm1284_vm10, %vm1285_vm15 }
 0x259   : > { %v1463_v36 = vmul.f32 %v1447_v42, %v1262_v17  ;;  %1504 = vst.msk [vmem:[%s2616_s25 + $0x58] sm:$0xff] %vm1492_vm7, %v1487_v45  ;;  %v1136_v41 = vadd.f32 %v1091_v4, %v912_v10  ;;  %vm1405_vm0 = vweird.f32 %v2720_v44  ;;  %v1416_v52 = vsub.f32 1.0, %v1415_v57  ;;  %v660_v21 = vpop.f32.mrf.mxu1  ;;  %v2993_v57 = vld [vmem:[#allocation8_spill] sm:$0xff] }
 0x25a   : > { %v848_v13 = vpop.f32.mrf.mxu2  ;;  %v1296_v16 = vsub.f32 1.0, %v1295_v28  ;;  %v1410_v55 = vand.u32 2147483648, %v2662_v22  ;;  %v658_v48 = vadd.f32 %v657_v14, %v544_v62  ;;  %vm1404_vm1 = vweird.f32 %v2662_v22  ;;  %v1838_v62 = vld [vmem:[%s1933_s24 + $0x68] sm:$0xff] }
 0x25b   : > { %v1479_v38 = vadd.f32 %v1835_v20, %v1463_v36  ;;  %v904_v30 = vadd.f32 %v848_v13, %v655_v3  ;;  %v1456_v33 = vsub.f32 %v1136_v41, %v1836_v2  ;;  %v1408_v11 = vand.u32 2147483647, %v2662_v22  ;;  %vm2846_vm3 = vmor %vm1404_vm1, %vm1405_vm0  ;;  %v1839_v28 = vld [vmem:[%s1933_s24 + $0x28] sm:$0xff] }
 0x25c   : > { %v1287_v22 = vsel %vm2840_vm2, %v2601_v23, %v1283_v15  ;;  %v1291_v61 = vor.u32 1.1754944e-38, %v1290_v32  ;;  %v1303_v20 = vand.u32 2147483647, %v2684_v50  ;;  %v2856_v42 = vpop.eup %1826  ;;  %v1430_v40 = vmul.f32 %v2830_v8, %v2778_v12 }
 0x25d   : > { %1496 = vst.msk [vmem:[%s2616_s25 + $0x18] sm:$0xff] %vm1492_vm7, %v1479_v38  ;;  %v1128_v31 = vadd.f32 %v2551_v53, %v904_v30  ;;  %v1472_v56 = vmul.f32 %v1456_v33, %v1397_v26  ;;  %v1407_v23 = vsel %vm2846_vm3, %v2720_v44, %v1403_v18  ;;  %v1417_v39 = vmul.f32 %v2785_v51, %v1416_v52  ;;  %v1101_v26 = vpop.permute.xlu0 %1100 }
 0x25e   : > { %v875_v63 = vpop.f32.mrf.mxu3  ;;  %v1411_v45 = vor.u32 1.1754944e-38, %v1410_v55  ;;  %v1297_v29 = vmul.f32 %v2774_v19, %v1296_v16  ;;  %vm1409_vm4 = vcmp.eq.f32.partialorder %v1408_v11, 8.507059e+37  ;;  %v1292_v36 = vsel %vm2815_vm13, %v1291_v61, %v1287_v22  ;;  %v2998_v22 = vld [vmem:[#allocation6_spill] sm:$0xff]  ;;  %v2999_v61 = vld [vmem:[#allocation9_spill] sm:$0xff] }
 0x25f   : > { %v1448_v46 = vsub.f32 %v1128_v31, %v1837_v6  ;;  %v1488_v58 = vadd.f32 %v1836_v2, %v1472_v56  ;;  %v913_v53 = vadd.f32 %v875_v63, %v682_v25  ;;  %vm1300_vm5 = vweird.f32 %v2774_v19 }
 0x260   : > { %v547_v32 = vpop.f32.mrf.mxu0  ;;  %v1310_v44 = vmul.f32 %v2856_v42, %v2787_v37  ;;  %v1412_v9 = vsel %vm1409_vm4, %v1411_v45, %v1407_v23  ;;  %v1418_v13 = vadd.f32 %v2785_v51, %v1417_v39  ;;  %vm1420_vm6 = vweird.f32 %v2785_v51 }
 0x261   : > { %v1464_v34 = vmul.f32 %v1448_v46, %v1277_v54  ;;  %1505 = vst.msk [vmem:[%s2616_s25 + $0x60] sm:$0xff] %vm1492_vm7, %v1488_v58  ;;  %v1137_v49 = vadd.f32 %v1096_v27, %v913_v53  ;;  %v685_v54 = vadd.f32 %v2992_v59, %v2327_v7  ;;  %v1431_v35 = vsub.f32 1.0, %v1430_v40  ;;  %v1840_v58 = vld [vmem:[%s1933_s24 + $0x70] sm:$0xff]  ;;  %v663_v11 = vpop.f32.mrf.mxu1 }
 0x262   : > { %v851_v3 = vpop.f32.mrf.mxu2  ;;  %v1425_v30 = vand.u32 2147483648, %v2713_v0  ;;  %v661_v17 = vadd.f32 %v660_v21, %v547_v32  ;;  %v1298_v7 = vadd.f32 %v2774_v19, %v1297_v29  ;;  %vm1419_vm8 = vweird.f32 %v2713_v0 }
 0x263   : > { %v1480_v14 = vadd.f32 %v1837_v6, %v1464_v34  ;;  %v905_v10 = vadd.f32 %v851_v3, %v658_v48  ;;  %v1457_v4 = vsub.f32 %v1137_v49, %v1838_v62  ;;  %v1423_v25 = vand.u32 2147483647, %v2713_v0  ;;  %vm2885_vm9 = vmor %vm1419_vm8, %vm1420_vm6 }
 0x264   : > { %v1305_v56 = vand.u32 2147483648, %v2684_v50  ;;  %v1311_v18 = vsub.f32 1.0, %v1310_v44  ;;  %v1422_v16 = vsel %vm2885_vm9, %v2785_v51, %v1418_v13  ;;  %vm1299_vm10 = vweird.f32 %v2684_v50 }
 0x265   : > { %1497 = vst.msk [vmem:[%s2616_s25 + $0x20] sm:$0xff] %vm1492_vm7, %v1480_v14  ;;  %v1129_v41 = vadd.f32 %v2993_v57, %v905_v10  ;;  %v1473_v1 = vmul.f32 %v1457_v4, %v1412_v9  ;;  %v1432_v0 = vmul.f32 %v2830_v8, %v1431_v35  ;;  %v1426_v63 = vor.u32 1.1754944e-38, %v1425_v30  ;;  %vm2899_vm11 = vmor %vm1299_vm10, %vm1300_vm5  ;;  %v1106_v10 = vpop.permute.xlu1 %1105  ;;  %v1843_v30 = vld [vmem:[%s1933_s24 + $0x38] sm:$0xff] }
 0x266   : > { %v878_v43 = vpop.f32.mrf.mxu3  ;;  %vm1424_vm12 = vcmp.eq.f32.partialorder %v1423_v25, 8.507059e+37  ;;  %v1302_v51 = vsel %vm2899_vm11, %v2774_v19, %v1298_v7  ;;  %vm1304_vm13 = vcmp.eq.f32.partialorder %v1303_v20, 8.507059e+37  ;;  %v1306_v34 = vor.u32 1.1754944e-38, %v1305_v56  ;;  %v1841_v20 = vld [vmem:[%s1933_s24 + $0x30] sm:$0xff] }
 0x267   : > { %v1449_v38 = vsub.f32 %v1129_v41, %v1839_v28  ;;  %v1489_v2 = vadd.f32 %v1838_v62, %v1473_v1  ;;  %v914_v33 = vadd.f32 %v878_v43, %v685_v54  ;;  %v1427_v5 = vsel %vm1424_vm12, %v1426_v63, %v1422_v16  ;;  %v1842_v1 = vld [vmem:[%s1933_s24 + $0x78] sm:$0xff] }
 0x268   : > { %v550_v50 = vpop.f32.mrf.mxu0  ;;  %v1312_v60 = vmul.f32 %v2856_v42, %v1311_v18  ;;  %v688_v21 = vadd.f32 %v2999_v61, %v2998_v22  ;;  %v1433_v49 = vadd.f32 %v2830_v8, %v1432_v0  ;;  %vm1435_vm14 = vweird.f32 %v2830_v8 }
 0x269   : > { %v1465_v31 = vmul.f32 %v1449_v38, %v1292_v36  ;;  %1506 = vst.msk [vmem:[%s2616_s25 + $0x68] sm:$0xff] %vm1492_vm7, %v1489_v2  ;;  %v1138_v52 = vadd.f32 %v1101_v26, %v914_v33  ;;  %v1307_v19 = vsel %vm1304_vm13, %v1306_v34, %v1302_v51  ;;  %v1440_v39 = vand.u32 2147483648, %v2778_v12 }
 0x26a   : > { %v854_v6 = vpop.f32.mrf.mxu2  ;;  %v664_v32 = vadd.f32 %v663_v11, %v550_v50  ;;  %vm1434_vm15 = vweird.f32 %v2778_v12  ;;  %v1438_v45 = vand.u32 2147483647, %v2778_v12  ;;  %v1313_v4 = vadd.f32 %v2856_v42, %v1312_v60 }
 0x26b   : > { %v1481_v46 = vadd.f32 %v1839_v28, %v1465_v31  ;;  %v906_v55 = vadd.f32 %v854_v6, %v661_v17  ;;  %v1458_v53 = vsub.f32 %v1138_v52, %v1840_v58  ;;  %vm2919_vm0 = vmor %vm1434_vm15, %vm1435_vm14  ;;  %vm1315_vm1 = vweird.f32 %v2856_v42 }
 0x26c   : > { %v1437_v44 = vsel %vm2919_vm0, %v2830_v8, %v1433_v49  ;;  %vm1314_vm2 = vweird.f32 %v2787_v37  ;;  %v1320_v59 = vand.u32 2147483648, %v2787_v37  ;;  %v1441_v9 = vor.u32 1.1754944e-38, %v1440_v39 }
 0x26d   : > { %1498 = vst.msk [vmem:[%s2616_s25 + $0x28] sm:$0xff] %vm1492_vm7, %v1481_v46  ;;  %v1130_v27 = vadd.f32 %v2565_v47, %v906_v55  ;;  %v1474_v40 = vmul.f32 %v1458_v53, %v1427_v5  ;;  %v1318_v41 = vand.u32 2147483647, %v2787_v37  ;;  %vm1439_vm3 = vcmp.eq.f32.partialorder %v1438_v45, 8.507059e+37  ;;  %vm1316_vm4 = vmor %vm1314_vm2, %vm1315_vm1 }
 0x26e   : > { %v881_v3 = vpop.f32.mrf.mxu3  ;;  %v1442_v8 = vsel %vm1439_vm3, %v1441_v9, %v1437_v44  ;;  %v1317_v28 = vsel %vm1316_vm4, %v2856_v42, %v1313_v4  ;;  %v1321_v43 = vor.u32 1.1754944e-38, %v1320_v59 }
 0x26f   : > { %v1450_v23 = vsub.f32 %v1130_v27, %v1841_v20  ;;  %v1490_v47 = vadd.f32 %v1840_v58, %v1474_v40  ;;  %v915_v14 = vadd.f32 %v881_v3, %v688_v21  ;;  %vm1319_vm5 = vcmp.eq.f32.partialorder %v1318_v41, 8.507059e+37 }
 0x270   : > { %v1322_v37 = vsel %vm1319_vm5, %v1321_v43, %v1317_v28 }
 0x271   : > { %v1466_v29 = vmul.f32 %v1450_v23, %v1307_v19  ;;  %1507 = vst.msk [vmem:[%s2616_s25 + $0x70] sm:$0xff] %vm1492_vm7, %v1490_v47  ;;  %v1139_v36 = vadd.f32 %v1106_v10, %v915_v14 }
 0x272   : > { %v857_v12 = vpop.f32.mrf.mxu2 }
 0x273   : > { %v1482_v54 = vadd.f32 %v1841_v20, %v1466_v29  ;;  %v907_v57 = vadd.f32 %v857_v12, %v664_v32  ;;  %v1459_v13 = vsub.f32 %v1139_v36, %v1842_v1 }
 0x275   : > { %1499 = vst.msk [vmem:[%s2616_s25 + $0x30] sm:$0xff] %vm1492_vm7, %v1482_v54  ;;  %v1131_v35 = vadd.f32 %v2618_v24, %v907_v57  ;;  %v1475_v38 = vmul.f32 %v1459_v13, %v1442_v8 }
 0x277   : > { %v1451_v17 = vsub.f32 %v1131_v35, %v1843_v30  ;;  %v1491_v7 = vadd.f32 %v1842_v1, %v1475_v38 }
 0x279   : > { %v1467_v2 = vmul.f32 %v1451_v17, %v1322_v37  ;;  %1508 = vst.msk [vmem:[%s2616_s25 + $0x78] sm:$0xff] %vm1492_vm7, %v1491_v7 }
 0x27b   : > { %v1483_v33 = vadd.f32 %v1843_v30, %v1467_v2 }
 0x27d   : > { %1500 = vst.msk [vmem:[%s2616_s25 + $0x38] sm:$0xff] %vm1492_vm7, %v1483_v33 }
 0x27e PF: > { %s14_s12 = sadd.s32 1, %s1884_s12  }
 0x27f   : > { %p11_p7 = scmp.ge.s32.totalorder %s14_s12, 4  }
 0x281   :  { %13 = sbr.rel (!%p11_p7) target bundleno = 1 (0x1), region = 69 }
 0x286   :  { %1530 = vsyncpa [#allocation4], 1 }
 0x287   :  { %1532 = vsyncpa [#allocation4 + $0x1], 1 }

</bundles_post_ra>
